<compile_context>
chip_gen: v7x
topology: tpu7x:2x2x1
jax: 0.10.0
libtpu: 0.0.40
codegen_flags: <defaults>
</compile_context>

<pallas_src>
import functools

import jax
import jax.numpy as jnp
from jax.experimental import pallas as pl
from jax.experimental.pallas import tpu as pltpu
import numpy as np


_VMEM = pl.BlockSpec(memory_space=pltpu.MemorySpace.VMEM)


# -----------------------------------------------------------------------------
# Fused Pallas kernel: obs -> action (t = 0)
# -----------------------------------------------------------------------------
def _gru_policy_kernel(obs_ref, slab_ref, out_ref, xb_ref, gi_ref, outa_ref,
                       outb_ref, *, layout, num_layers, T, S, R, H, BP):
    f32 = jnp.float32
    B = obs_ref.shape[0]
    L = num_layers
    GW = 2 * H                               # merged per-gate width: [fwd | bwd]

    def blk(name):                           # static carve-out of the param slab
        r0, nr, nc = layout[name]
        return slab_ref[r0:r0 + nr, 0:nc]

    def sig(x):                              # sigmoid as a single EUP tanh
        return 0.5 * jnp.tanh(0.5 * x) + 0.5

    def dot(a, b):
        return jnp.dot(a, b, preferred_element_type=f32)

    def rb(t):                               # time-block rows (8-sublane aligned)
        return slice(t * BP, t * BP + B)

    # Deterministic pad rows (they feed matmul rows that are never read back).
    xb_ref[...] = jnp.zeros(xb_ref.shape, f32)
    outa_ref[...] = jnp.zeros(outa_ref.shape, f32)
    outb_ref[...] = jnp.zeros(outb_ref.shape, f32)

    # ---- Stage layer-0 inputs: row block t holds [x_t | x_{T-1-t}] ------------
    state = obs_ref[:, 0:S]
    for t in range(T):
        traj_t = obs_ref[:, S + t * R:S + (t + 1) * R]
        xb_ref[rb(t), 0:S] = state
        xb_ref[rb(t), S:S + R] = traj_t
        if L >= 2:
            xb_ref[rb(t), S + R:2 * S + R] = state
            xb_ref[rb(T - 1 - t), 2 * S + R:2 * (S + R)] = traj_t

    # ---- Non-last layers: merged fwd+bwd recurrence ---------------------------
    out_scr = (outa_ref, outb_ref)
    prev_out = None
    for l in range(L - 1):
        din = (S + R) if l == 0 else 2 * H
        if l >= 1:
            # Rebuild the doubled input [x_s | x_{T-1-s}] from the previous layer.
            for s in range(T):
                xb_ref[rb(s), 0:2 * H] = prev_out[rb(s), :]
                xb_ref[rb(s), 2 * H:4 * H] = prev_out[rb(T - 1 - s), :]
        # ONE batched matmul for all h-independent gate pre-activations
        # (b_hh of the r/z gates is already folded into the packed bias).
        gi_ref[...] = dot(xb_ref[:, 0:2 * din], blk(f"l{l}_win")) + blk(f"l{l}_bin")
        whh = blk(f"l{l}_whh")                                # (2H, 6H) block-diag
        ghn_bias = jnp.broadcast_to(blk(f"l{l}_bhn"), (B, GW))  # hoisted b_hh_n
        cur = out_scr[l % 2]
        h = None                                              # h0 == 0 (registers)
        for s in range(T):                                    # the only serial region
            gi = gi_ref[rb(s), :]
            if h is None:
                rz = sig(gi[:, 0:2 * GW])
                r, z = rz[:, 0:GW], rz[:, GW:2 * GW]
                n = jnp.tanh(gi[:, 2 * GW:] + r * ghn_bias)
                h = (1.0 - z) * n
            else:
                gh = dot(h, whh)                              # one MXU pass per step
                rz = sig(gi[:, 0:2 * GW] + gh[:, 0:2 * GW])
                r, z = rz[:, 0:GW], rz[:, GW:2 * GW]
                n = jnp.tanh(gi[:, 2 * GW:] + r * (gh[:, 2 * GW:] + ghn_bias))
                h = (1.0 - z) * n + z * h
            cur[rb(s), 0:H] = h[:, 0:H]                       # fwd output @ t = s
            cur[rb(T - 1 - s), H:2 * H] = h[:, H:2 * H]       # bwd output @ t = T-1-s
        prev_out = cur

    # ---- Last layer: forward needs only t = 0; backward runs the full chain ---
    last = L - 1
    x_last = xb_ref[:, 0:S + R] if L == 1 else prev_out[:, :]

    # forward direction: single t=0 cell (h0 == 0 -> no Whh matmul at all)
    gi0 = dot(x_last[0:B, :], blk(f"l{last}_f_win")) + blk(f"l{last}_f_bin")
    rz = sig(gi0[:, 0:2 * H])
    r, z = rz[:, 0:H], rz[:, H:2 * H]
    n = jnp.tanh(gi0[:, 2 * H:] + r * jnp.broadcast_to(blk(f"l{last}_f_bhn"), (B, H)))
    h_f0 = (1.0 - z) * n

    # backward direction: batched input pre-activations + T-step reverse chain
    gi_ref[:, 0:3 * H] = dot(x_last, blk(f"l{last}_b_win")) + blk(f"l{last}_b_bin")
    whh_b = blk(f"l{last}_b_whh")
    ghn_b = jnp.broadcast_to(blk(f"l{last}_b_bhn"), (B, H))
    h = None
    for s in range(T):
        gi = gi_ref[rb(T - 1 - s), 0:3 * H]
        if h is None:
            rz = sig(gi[:, 0:2 * H])
            r, z = rz[:, 0:H], rz[:, H:2 * H]
            n = jnp.tanh(gi[:, 2 * H:] + r * ghn_b)
            h = (1.0 - z) * n
        else:
            gh = dot(h, whh_b)
            rz = sig(gi[:, 0:2 * H] + gh[:, 0:2 * H])
            r, z = rz[:, 0:H], rz[:, H:2 * H]
            n = jnp.tanh(gi[:, 2 * H:] + r * (gh[:, 2 * H:] + ghn_b))
            h = (1.0 - z) * n + z * h
    h_b0 = h

    # ---- fc + bounded tanh at t = 0 -------------------------------------------
    fcw = blk("fc_w")                                   # (2H, A): [fwd rows | bwd rows]
    y = dot(h_f0, fcw[0:H, :]) + dot(h_b0, fcw[H:2 * H, :]) + blk("fc_b")
    hi, lo = blk("act_high"), blk("act_low")
    out_ref[...] = ((hi - lo) * 0.5 * jnp.tanh(y) + (hi + lo) * 0.5).astype(out_ref.dtype)


# -----------------------------------------------------------------------------
# Parameter packing into ONE slab (done once, outside the per-call path)
# -----------------------------------------------------------------------------
class _SlabPacker:
    """Packs many small parameter blocks into one 2-D f32 slab (one DMA)."""

    def __init__(self):
        self._blocks = []

    def add(self, name, arr):
        arr = np.asarray(arr, np.float32)
        if arr.ndim == 1:
            arr = arr.reshape(1, -1)
        assert arr.ndim == 2
        self._blocks.append((name, arr))

    def finalize(self):
        width = max(a.shape[1] for _, a in self._blocks)
        layout = {}
        row = 0
        for name, a in self._blocks:
            layout[name] = (row, a.shape[0], a.shape[1])
            row += ((a.shape[0] + 7) // 8) * 8          # keep each block 8-row aligned
        slab = np.zeros((((row + 7) // 8) * 8, width), np.float32)
        for name, a in self._blocks:
            r0, nr, nc = layout[name]
            slab[r0:r0 + nr, :nc] = a
        return jnp.asarray(slab), layout


def pack_params(params, *, state_dim, ref_obs_dim, hidden_dim, num_layers,
                bidirectional):
    """Re-layout PyTorch-style GRU/Linear parameters into a single VMEM slab."""
    assert bidirectional, "fused kernel packs the bidirectional layout"
    H = hidden_dim
    GW = 2 * H                                    # merged per-gate width [fwd | bwd]
    S, R, L = state_dim, ref_obs_dim, num_layers
    pk = _SlabPacker()
    f = lambda a: np.asarray(a, np.float32)

    # Non-last layers: fused fwd+bwd recurrence with block-diagonal weights and
    # gate lanes interleaved as [r_f r_b | z_f z_b | n_f n_b].
    for l in range(L - 1):
        din = (S + R) if l == 0 else 2 * H
        w_in = np.zeros((2 * din, 3 * GW), np.float32)
        whh_m = np.zeros((GW, 3 * GW), np.float32)
        b_in = np.zeros((1, 3 * GW), np.float32)
        bhn = np.zeros((1, GW), np.float32)
        for d, sfx in enumerate(("", "_rev")):
            wih, whh, bih, bhh = (f(a) for a in params[f"gru_l{l}{sfx}"])
            wih_t, whh_t = wih.T, whh.T           # (din, 3H), (H, 3H); gates r|z|n
            for g in range(3):
                cols = slice(g * GW + d * H, g * GW + (d + 1) * H)
                w_in[d * din:(d + 1) * din, cols] = wih_t[:, g * H:(g + 1) * H]
                whh_m[d * H:(d + 1) * H, cols] = whh_t[:, g * H:(g + 1) * H]
                b = bih[g * H:(g + 1) * H].copy()
                if g < 2:                          # fold b_hh into r/z input bias
                    b += bhh[g * H:(g + 1) * H]
                b_in[0, cols] = b
            bhn[0, d * H:(d + 1) * H] = bhh[2 * H:]
        pk.add(f"l{l}_win", w_in)
        pk.add(f"l{l}_whh", whh_m)
        pk.add(f"l{l}_bin", b_in)
        pk.add(f"l{l}_bhn", bhn)

    # Last layer: forward needs only the t=0 cell (no Whh); backward is a chain.
    last = L - 1
    for sfx, tag in (("", "f"), ("_rev", "b")):
        wih, whh, bih, bhh = (f(a) for a in params[f"gru_l{last}{sfx}"])
        b_in = bih.copy()
        b_in[:2 * H] += bhh[:2 * H]               # fold b_hh_{r,z}
        pk.add(f"l{last}_{tag}_win", wih.T)       # (din_last, 3H)
        pk.add(f"l{last}_{tag}_bin", b_in)
        pk.add(f"l{last}_{tag}_bhn", bhh[2 * H:])
        if tag == "b":
            pk.add(f"l{last}_b_whh", whh.T)       # (H, 3H)

    pk.add("fc_w", f(params["fc_w"]).T)           # (2H, A) = [fwd rows | bwd rows]
    pk.add("fc_b", f(params["fc_b"]))
    pk.add("act_high", f(params["act_high_lim"]))
    pk.add("act_low", f(params["act_low_lim"]))
    return pk.finalize()


# -----------------------------------------------------------------------------
# Forward builder: one gridless pallas_call, 2 input DMAs, everything in VMEM
# -----------------------------------------------------------------------------
def build_forward(layout, *, state_dim, ref_obs_dim, hidden_dim, num_layers,
                  bidirectional, act_dim):
    """Returns a jitted (obs, slab) -> action callable (GRUFullPolicy2.forward)."""
    assert bidirectional, "fused kernel only implements bidirectional=True"
    # TODO(synk): bidirectional=False forward path is not implemented in the fused kernel.
    S, R, H, L, A = state_dim, ref_obs_dim, hidden_dim, num_layers, act_dim
    GW = 2 * H

    @jax.jit
    def forward(obs, slab):
        B, D = obs.shape
        T = (D - S) // R
        BP = ((B + 7) // 8) * 8                       # time-block rows, 8-sublane aligned
        kernel = functools.partial(
            _gru_policy_kernel, layout=layout, num_layers=L,
            T=T, S=S, R=R, H=H, BP=BP)
        xbw = 2 * max(S + R, 2 * H)
        return pl.pallas_call(
            kernel,
            out_shape=jax.ShapeDtypeStruct((B, A), jnp.float32),
            in_specs=[_VMEM, _VMEM],
            out_specs=_VMEM,
            scratch_shapes=[
                pltpu.VMEM((T * BP, xbw), jnp.float32),      # doubled input staging
                pltpu.VMEM((T * BP, 3 * GW), jnp.float32),   # batched gate pre-acts
                pltpu.VMEM((T * BP, 2 * H), jnp.float32),    # layer output (ping)
                pltpu.VMEM((T * BP, 2 * H), jnp.float32),    # layer output (pong)
            ],
        )(obs, slab)

    return forward


# -----------------------------------------------------------------------------
# Pure-JAX reference (for in-script correctness check)
# -----------------------------------------------------------------------------
def _gru_cell_ref(x_t, h_prev, wih, whh, bih, bhh):
    H = h_prev.shape[-1]
    gi = x_t @ wih.T + bih
    gh = h_prev @ whh.T + bhh
    r = jax.nn.sigmoid(gi[:, :H] + gh[:, :H])
    z = jax.nn.sigmoid(gi[:, H:2 * H] + gh[:, H:2 * H])
    n = jnp.tanh(gi[:, 2 * H:] + r * gh[:, 2 * H:])
    return (1.0 - z) * n + z * h_prev


def _gru_dir_ref(x_btd, wih, whh, bih, bhh, reverse):
    B, T, _ = x_btd.shape
    H = whh.shape[1]
    h = jnp.zeros((B, H), jnp.float32)
    ts = range(T - 1, -1, -1) if reverse else range(T)
    outs = [None] * T
    for t in ts:
        h = _gru_cell_ref(x_btd[:, t, :], h, wih, whh, bih, bhh)
        outs[t] = h
    return jnp.stack(outs, axis=1)


def reference_forward(obs, params, *, state_dim, ref_obs_dim, num_layers, bidirectional):
    B = obs.shape[0]
    state = obs[:, :state_dim]
    traj = obs[:, state_dim:].reshape(B, -1, ref_obs_dim)
    T = traj.shape[1]
    x = jnp.concatenate(
        [jnp.broadcast_to(state[:, None, :], (B, T, state_dim)), traj], axis=2)
    h = x
    for l in range(num_layers):
        fwd = _gru_dir_ref(h, *params[f"gru_l{l}"], reverse=False)
        if bidirectional:
            bwd = _gru_dir_ref(h, *params[f"gru_l{l}_rev"], reverse=True)
            h = jnp.concatenate([fwd, bwd], axis=2)
        else:
            h = fwd
    y = h @ params["fc_w"].T + params["fc_b"]
    hi, lo = params["act_high_lim"], params["act_low_lim"]
    act = (hi - lo) / 2 * jnp.tanh(y) + (hi + lo) / 2
    return act[:, 0, :]


# -----------------------------------------------------------------------------
# Deterministic parameter construction (mimics nn.GRU / nn.Linear shapes)
# -----------------------------------------------------------------------------
def make_params(key, *, input_dim, hidden_dim, num_layers, bidirectional, act_dim):
    params = {}
    k = 1.0 / np.sqrt(hidden_dim)
    dirs = ["", "_rev"] if bidirectional else [""]
    n_dir = 2 if bidirectional else 1
    for l in range(num_layers):
        layer_in = input_dim if l == 0 else hidden_dim * n_dir
        for d in dirs:
            key, k1, k2, k3, k4 = jax.random.split(key, 5)
            params[f"gru_l{l}{d}"] = (
                jax.random.uniform(k1, (3 * hidden_dim, layer_in), jnp.float32, -k, k),
                jax.random.uniform(k2, (3 * hidden_dim, hidden_dim), jnp.float32, -k, k),
                jax.random.uniform(k3, (3 * hidden_dim,), jnp.float32, -k, k),
                jax.random.uniform(k4, (3 * hidden_dim,), jnp.float32, -k, k),
            )
    fc_in = hidden_dim * n_dir
    kf = 1.0 / np.sqrt(fc_in)
    key, k1, k2 = jax.random.split(key, 3)
    params["fc_w"] = jax.random.uniform(k1, (act_dim, fc_in), jnp.float32, -kf, kf)
    params["fc_b"] = jax.random.uniform(k2, (act_dim,), jnp.float32, -kf, kf)
    params["act_high_lim"] = jnp.array([1.0, 2.0, 0.5], jnp.float32)
    params["act_low_lim"] = jnp.array([-1.0, -2.0, -0.5], jnp.float32)
    return params


if __name__ == "__main__":
    # Module configuration (kwargs of GRUFullPolicy2.__init__)
    state_dim = 6
    ref_obs_dim = 4
    pre_horizon = 8          # -> sequence length T = 8
    hidden_dim = 32
    num_layers = 2
    bidirectional = True
    act_dim = 3
    batch = 2
    input_dim = state_dim + ref_obs_dim

    key = jax.random.PRNGKey(0)
    key, pkey, okey = jax.random.split(key, 3)
    params = make_params(pkey, input_dim=input_dim, hidden_dim=hidden_dim,
                         num_layers=num_layers, bidirectional=bidirectional,
                         act_dim=act_dim)
    slab, layout = pack_params(params, state_dim=state_dim, ref_obs_dim=ref_obs_dim,
                               hidden_dim=hidden_dim, num_layers=num_layers,
                               bidirectional=bidirectional)
    forward = build_forward(layout, state_dim=state_dim, ref_obs_dim=ref_obs_dim,
                            hidden_dim=hidden_dim, num_layers=num_layers,
                            bidirectional=bidirectional, act_dim=act_dim)

    obs = jax.random.normal(okey, (batch, state_dim + pre_horizon * ref_obs_dim),
                            jnp.float32)

    action = jax.block_until_ready(forward(obs, slab))

    ref = jax.block_until_ready(reference_forward(
        obs, params, state_dim=state_dim, ref_obs_dim=ref_obs_dim,
        num_layers=num_layers, bidirectional=bidirectional))

    assert action.shape == (batch, act_dim), action.shape
    np.testing.assert_allclose(np.asarray(action), np.asarray(ref), rtol=1e-4, atol=1e-4)

    print("KERNEL_OK")
</pallas_src>

<mosaic_0001>
module attributes {stable_mosaic.version = 11 : i64} {
  func.func @_gru_policy_kernel(%arg0: memref<2x38xf32, #tpu.memory_space<vmem>>, %arg1: memref<384x192xf32, #tpu.memory_space<vmem>>, %arg2: memref<2x3xf32, #tpu.memory_space<vmem>>, %arg3: memref<64x128xf32, #tpu.memory_space<vmem>>, %arg4: memref<64x192xf32, #tpu.memory_space<vmem>>, %arg5: memref<64x64xf32, #tpu.memory_space<vmem>>, %arg6: memref<64x64xf32, #tpu.memory_space<vmem>>) attributes {dimension_semantics = [], scalar_prefetch = 0 : i64, scratch_operands = 4 : i64, tpu.core_type = #tpu.core_type<tc>} {
    %cst = arith.constant 0.000000e+00 : f32
    %0 = vector.broadcast %cst : f32 to vector<64x128xf32>
    %c0 = arith.constant 0 : index
    %c0_0 = arith.constant 0 : index
    %1 = vector.load %arg3[%c0, %c0_0] : memref<64x128xf32, #tpu.memory_space<vmem>>, vector<64x128xf32>
    tpu.vector_store %arg3[%c0, %c0_0], %0 {strides = array<i32>} : memref<64x128xf32, #tpu.memory_space<vmem>>, vector<64x128xf32>,
    %cst_1 = arith.constant 0.000000e+00 : f32
    %2 = vector.broadcast %cst_1 : f32 to vector<64x64xf32>
    %c0_2 = arith.constant 0 : index
    %c0_3 = arith.constant 0 : index
    %3 = vector.load %arg5[%c0_2, %c0_3] : memref<64x64xf32, #tpu.memory_space<vmem>>, vector<64x64xf32>
    tpu.vector_store %arg5[%c0_2, %c0_3], %2 {strides = array<i32>} : memref<64x64xf32, #tpu.memory_space<vmem>>, vector<64x64xf32>,
    %cst_4 = arith.constant 0.000000e+00 : f32
    %4 = vector.broadcast %cst_4 : f32 to vector<64x64xf32>
    %c0_5 = arith.constant 0 : index
    %c0_6 = arith.constant 0 : index
    %5 = vector.load %arg6[%c0_5, %c0_6] : memref<64x64xf32, #tpu.memory_space<vmem>>, vector<64x64xf32>
    tpu.vector_store %arg6[%c0_5, %c0_6], %4 {strides = array<i32>} : memref<64x64xf32, #tpu.memory_space<vmem>>, vector<64x64xf32>,
    %c0_7 = arith.constant 0 : index
    %c0_8 = arith.constant 0 : index
    %6 = vector.load %arg0[%c0_7, %c0_8] : memref<2x38xf32, #tpu.memory_space<vmem>>, vector<2x6xf32>
    %c0_9 = arith.constant 0 : index
    %c6 = arith.constant 6 : index
    %7 = vector.load %arg0[%c0_9, %c6] : memref<2x38xf32, #tpu.memory_space<vmem>>, vector<2x4xf32>
    %c0_10 = arith.constant 0 : index
    %c0_11 = arith.constant 0 : index
    %8 = vector.load %arg3[%c0_10, %c0_11] : memref<64x128xf32, #tpu.memory_space<vmem>>, vector<2x6xf32>
    tpu.vector_store %arg3[%c0_10, %c0_11], %6 {strides = array<i32>} : memref<64x128xf32, #tpu.memory_space<vmem>>, vector<2x6xf32>,
    %c0_12 = arith.constant 0 : index
    %c6_13 = arith.constant 6 : index
    %9 = vector.load %arg3[%c0_12, %c6_13] : memref<64x128xf32, #tpu.memory_space<vmem>>, vector<2x4xf32>
    tpu.vector_store %arg3[%c0_12, %c6_13], %7 {strides = array<i32>} : memref<64x128xf32, #tpu.memory_space<vmem>>, vector<2x4xf32>,
    %c0_14 = arith.constant 0 : index
    %c10 = arith.constant 10 : index
    %10 = vector.load %arg3[%c0_14, %c10] : memref<64x128xf32, #tpu.memory_space<vmem>>, vector<2x6xf32>
    tpu.vector_store %arg3[%c0_14, %c10], %6 {strides = array<i32>} : memref<64x128xf32, #tpu.memory_space<vmem>>, vector<2x6xf32>,
    %c56 = arith.constant 56 : index
    %c16 = arith.constant 16 : index
    %11 = vector.load %arg3[%c56, %c16] : memref<64x128xf32, #tpu.memory_space<vmem>>, vector<2x4xf32>
    tpu.vector_store %arg3[%c56, %c16], %7 {strides = array<i32>} : memref<64x128xf32, #tpu.memory_space<vmem>>, vector<2x4xf32>,
    %c0_15 = arith.constant 0 : index
    %c10_16 = arith.constant 10 : index
    %12 = vector.load %arg0[%c0_15, %c10_16] : memref<2x38xf32, #tpu.memory_space<vmem>>, vector<2x4xf32>
    %c8 = arith.constant 8 : index
    %c0_17 = arith.constant 0 : index
    %13 = vector.load %arg3[%c8, %c0_17] : memref<64x128xf32, #tpu.memory_space<vmem>>, vector<2x6xf32>
    tpu.vector_store %arg3[%c8, %c0_17], %6 {strides = array<i32>} : memref<64x128xf32, #tpu.memory_space<vmem>>, vector<2x6xf32>,
    %c8_18 = arith.constant 8 : index
    %c6_19 = arith.constant 6 : index
    %14 = vector.load %arg3[%c8_18, %c6_19] : memref<64x128xf32, #tpu.memory_space<vmem>>, vector<2x4xf32>
    tpu.vector_store %arg3[%c8_18, %c6_19], %12 {strides = array<i32>} : memref<64x128xf32, #tpu.memory_space<vmem>>, vector<2x4xf32>,
    %c8_20 = arith.constant 8 : index
    %c10_21 = arith.constant 10 : index
    %15 = vector.load %arg3[%c8_20, %c10_21] : memref<64x128xf32, #tpu.memory_space<vmem>>, vector<2x6xf32>
    tpu.vector_store %arg3[%c8_20, %c10_21], %6 {strides = array<i32>} : memref<64x128xf32, #tpu.memory_space<vmem>>, vector<2x6xf32>,
    %c48 = arith.constant 48 : index
    %c16_22 = arith.constant 16 : index
    %16 = vector.load %arg3[%c48, %c16_22] : memref<64x128xf32, #tpu.memory_space<vmem>>, vector<2x4xf32>
    tpu.vector_store %arg3[%c48, %c16_22], %12 {strides = array<i32>} : memref<64x128xf32, #tpu.memory_space<vmem>>, vector<2x4xf32>,
    %c0_23 = arith.constant 0 : index
    %c14 = arith.constant 14 : index
    %17 = vector.load %arg0[%c0_23, %c14] : memref<2x38xf32, #tpu.memory_space<vmem>>, vector<2x4xf32>
    %c16_24 = arith.constant 16 : index
    %c0_25 = arith.constant 0 : index
    %18 = vector.load %arg3[%c16_24, %c0_25] : memref<64x128xf32, #tpu.memory_space<vmem>>, vector<2x6xf32>
    tpu.vector_store %arg3[%c16_24, %c0_25], %6 {strides = array<i32>} : memref<64x128xf32, #tpu.memory_space<vmem>>, vector<2x6xf32>,
    %c16_26 = arith.constant 16 : index
    %c6_27 = arith.constant 6 : index
    %19 = vector.load %arg3[%c16_26, %c6_27] : memref<64x128xf32, #tpu.memory_space<vmem>>, vector<2x4xf32>
    tpu.vector_store %arg3[%c16_26, %c6_27], %17 {strides = array<i32>} : memref<64x128xf32, #tpu.memory_space<vmem>>, vector<2x4xf32>,
    %c16_28 = arith.constant 16 : index
    %c10_29 = arith.constant 10 : index
    %20 = vector.load %arg3[%c16_28, %c10_29] : memref<64x128xf32, #tpu.memory_space<vmem>>, vector<2x6xf32>
    tpu.vector_store %arg3[%c16_28, %c10_29], %6 {strides = array<i32>} : memref<64x128xf32, #tpu.memory_space<vmem>>, vector<2x6xf32>,
    %c40 = arith.constant 40 : index
    %c16_30 = arith.constant 16 : index
    %21 = vector.load %arg3[%c40, %c16_30] : memref<64x128xf32, #tpu.memory_space<vmem>>, vector<2x4xf32>
    tpu.vector_store %arg3[%c40, %c16_30], %17 {strides = array<i32>} : memref<64x128xf32, #tpu.memory_space<vmem>>, vector<2x4xf32>,
    %c0_31 = arith.constant 0 : index
    %c18 = arith.constant 18 : index
    %22 = vector.load %arg0[%c0_31, %c18] : memref<2x38xf32, #tpu.memory_space<vmem>>, vector<2x4xf32>
    %c24 = arith.constant 24 : index
    %c0_32 = arith.constant 0 : index
    %23 = vector.load %arg3[%c24, %c0_32] : memref<64x128xf32, #tpu.memory_space<vmem>>, vector<2x6xf32>
    tpu.vector_store %arg3[%c24, %c0_32], %6 {strides = array<i32>} : memref<64x128xf32, #tpu.memory_space<vmem>>, vector<2x6xf32>,
    %c24_33 = arith.constant 24 : index
    %c6_34 = arith.constant 6 : index
    %24 = vector.load %arg3[%c24_33, %c6_34] : memref<64x128xf32, #tpu.memory_space<vmem>>, vector<2x4xf32>
    tpu.vector_store %arg3[%c24_33, %c6_34], %22 {strides = array<i32>} : memref<64x128xf32, #tpu.memory_space<vmem>>, vector<2x4xf32>,
    %c24_35 = arith.constant 24 : index
    %c10_36 = arith.constant 10 : index
    %25 = vector.load %arg3[%c24_35, %c10_36] : memref<64x128xf32, #tpu.memory_space<vmem>>, vector<2x6xf32>
    tpu.vector_store %arg3[%c24_35, %c10_36], %6 {strides = array<i32>} : memref<64x128xf32, #tpu.memory_space<vmem>>, vector<2x6xf32>,
    %c32 = arith.constant 32 : index
    %c16_37 = arith.constant 16 : index
    %26 = vector.load %arg3[%c32, %c16_37] : memref<64x128xf32, #tpu.memory_space<vmem>>, vector<2x4xf32>
    tpu.vector_store %arg3[%c32, %c16_37], %22 {strides = array<i32>} : memref<64x128xf32, #tpu.memory_space<vmem>>, vector<2x4xf32>,
    %c0_38 = arith.constant 0 : index
    %c22 = arith.constant 22 : index
    %27 = vector.load %arg0[%c0_38, %c22] : memref<2x38xf32, #tpu.memory_space<vmem>>, vector<2x4xf32>
    %c32_39 = arith.constant 32 : index
    %c0_40 = arith.constant 0 : index
    %28 = vector.load %arg3[%c32_39, %c0_40] : memref<64x128xf32, #tpu.memory_space<vmem>>, vector<2x6xf32>
    tpu.vector_store %arg3[%c32_39, %c0_40], %6 {strides = array<i32>} : memref<64x128xf32, #tpu.memory_space<vmem>>, vector<2x6xf32>,
    %c32_41 = arith.constant 32 : index
    %c6_42 = arith.constant 6 : index
    %29 = vector.load %arg3[%c32_41, %c6_42] : memref<64x128xf32, #tpu.memory_space<vmem>>, vector<2x4xf32>
    tpu.vector_store %arg3[%c32_41, %c6_42], %27 {strides = array<i32>} : memref<64x128xf32, #tpu.memory_space<vmem>>, vector<2x4xf32>,
    %c32_43 = arith.constant 32 : index
    %c10_44 = arith.constant 10 : index
    %30 = vector.load %arg3[%c32_43, %c10_44] : memref<64x128xf32, #tpu.memory_space<vmem>>, vector<2x6xf32>
    tpu.vector_store %arg3[%c32_43, %c10_44], %6 {strides = array<i32>} : memref<64x128xf32, #tpu.memory_space<vmem>>, vector<2x6xf32>,
    %c24_45 = arith.constant 24 : index
    %c16_46 = arith.constant 16 : index
    %31 = vector.load %arg3[%c24_45, %c16_46] : memref<64x128xf32, #tpu.memory_space<vmem>>, vector<2x4xf32>
    tpu.vector_store %arg3[%c24_45, %c16_46], %27 {strides = array<i32>} : memref<64x128xf32, #tpu.memory_space<vmem>>, vector<2x4xf32>,
    %c0_47 = arith.constant 0 : index
    %c26 = arith.constant 26 : index
    %32 = vector.load %arg0[%c0_47, %c26] : memref<2x38xf32, #tpu.memory_space<vmem>>, vector<2x4xf32>
    %c40_48 = arith.constant 40 : index
    %c0_49 = arith.constant 0 : index
    %33 = vector.load %arg3[%c40_48, %c0_49] : memref<64x128xf32, #tpu.memory_space<vmem>>, vector<2x6xf32>
    tpu.vector_store %arg3[%c40_48, %c0_49], %6 {strides = array<i32>} : memref<64x128xf32, #tpu.memory_space<vmem>>, vector<2x6xf32>,
    %c40_50 = arith.constant 40 : index
    %c6_51 = arith.constant 6 : index
    %34 = vector.load %arg3[%c40_50, %c6_51] : memref<64x128xf32, #tpu.memory_space<vmem>>, vector<2x4xf32>
    tpu.vector_store %arg3[%c40_50, %c6_51], %32 {strides = array<i32>} : memref<64x128xf32, #tpu.memory_space<vmem>>, vector<2x4xf32>,
    %c40_52 = arith.constant 40 : index
    %c10_53 = arith.constant 10 : index
    %35 = vector.load %arg3[%c40_52, %c10_53] : memref<64x128xf32, #tpu.memory_space<vmem>>, vector<2x6xf32>
    tpu.vector_store %arg3[%c40_52, %c10_53], %6 {strides = array<i32>} : memref<64x128xf32, #tpu.memory_space<vmem>>, vector<2x6xf32>,
    %c16_54 = arith.constant 16 : index
    %c16_55 = arith.constant 16 : index
    %36 = vector.load %arg3[%c16_54, %c16_55] : memref<64x128xf32, #tpu.memory_space<vmem>>, vector<2x4xf32>
    tpu.vector_store %arg3[%c16_54, %c16_55], %32 {strides = array<i32>} : memref<64x128xf32, #tpu.memory_space<vmem>>, vector<2x4xf32>,
    %c0_56 = arith.constant 0 : index
    %c30 = arith.constant 30 : index
    %37 = vector.load %arg0[%c0_56, %c30] : memref<2x38xf32, #tpu.memory_space<vmem>>, vector<2x4xf32>
    %c48_57 = arith.constant 48 : index
    %c0_58 = arith.constant 0 : index
    %38 = vector.load %arg3[%c48_57, %c0_58] : memref<64x128xf32, #tpu.memory_space<vmem>>, vector<2x6xf32>
    tpu.vector_store %arg3[%c48_57, %c0_58], %6 {strides = array<i32>} : memref<64x128xf32, #tpu.memory_space<vmem>>, vector<2x6xf32>,
    %c48_59 = arith.constant 48 : index
    %c6_60 = arith.constant 6 : index
    %39 = vector.load %arg3[%c48_59, %c6_60] : memref<64x128xf32, #tpu.memory_space<vmem>>, vector<2x4xf32>
    tpu.vector_store %arg3[%c48_59, %c6_60], %37 {strides = array<i32>} : memref<64x128xf32, #tpu.memory_space<vmem>>, vector<2x4xf32>,
    %c48_61 = arith.constant 48 : index
    %c10_62 = arith.constant 10 : index
    %40 = vector.load %arg3[%c48_61, %c10_62] : memref<64x128xf32, #tpu.memory_space<vmem>>, vector<2x6xf32>
    tpu.vector_store %arg3[%c48_61, %c10_62], %6 {strides = array<i32>} : memref<64x128xf32, #tpu.memory_space<vmem>>, vector<2x6xf32>,
    %c8_63 = arith.constant 8 : index
    %c16_64 = arith.constant 16 : index
    %41 = vector.load %arg3[%c8_63, %c16_64] : memref<64x128xf32, #tpu.memory_space<vmem>>, vector<2x4xf32>
    tpu.vector_store %arg3[%c8_63, %c16_64], %37 {strides = array<i32>} : memref<64x128xf32, #tpu.memory_space<vmem>>, vector<2x4xf32>,
    %c0_65 = arith.constant 0 : index
    %c34 = arith.constant 34 : index
    %42 = vector.load %arg0[%c0_65, %c34] : memref<2x38xf32, #tpu.memory_space<vmem>>, vector<2x4xf32>
    %c56_66 = arith.constant 56 : index
    %c0_67 = arith.constant 0 : index
    %43 = vector.load %arg3[%c56_66, %c0_67] : memref<64x128xf32, #tpu.memory_space<vmem>>, vector<2x6xf32>
    tpu.vector_store %arg3[%c56_66, %c0_67], %6 {strides = array<i32>} : memref<64x128xf32, #tpu.memory_space<vmem>>, vector<2x6xf32>,
    %c56_68 = arith.constant 56 : index
    %c6_69 = arith.constant 6 : index
    %44 = vector.load %arg3[%c56_68, %c6_69] : memref<64x128xf32, #tpu.memory_space<vmem>>, vector<2x4xf32>
    tpu.vector_store %arg3[%c56_68, %c6_69], %42 {strides = array<i32>} : memref<64x128xf32, #tpu.memory_space<vmem>>, vector<2x4xf32>,
    %c56_70 = arith.constant 56 : index
    %c10_71 = arith.constant 10 : index
    %45 = vector.load %arg3[%c56_70, %c10_71] : memref<64x128xf32, #tpu.memory_space<vmem>>, vector<2x6xf32>
    tpu.vector_store %arg3[%c56_70, %c10_71], %6 {strides = array<i32>} : memref<64x128xf32, #tpu.memory_space<vmem>>, vector<2x6xf32>,
    %c0_72 = arith.constant 0 : index
    %c16_73 = arith.constant 16 : index
    %46 = vector.load %arg3[%c0_72, %c16_73] : memref<64x128xf32, #tpu.memory_space<vmem>>, vector<2x4xf32>
    tpu.vector_store %arg3[%c0_72, %c16_73], %42 {strides = array<i32>} : memref<64x128xf32, #tpu.memory_space<vmem>>, vector<2x4xf32>,
    %c0_74 = arith.constant 0 : index
    %c0_75 = arith.constant 0 : index
    %47 = vector.load %arg3[%c0_74, %c0_75] : memref<64x128xf32, #tpu.memory_space<vmem>>, vector<64x20xf32>
    %c0_76 = arith.constant 0 : index
    %c0_77 = arith.constant 0 : index
    %48 = vector.load %arg1[%c0_76, %c0_77] : memref<384x192xf32, #tpu.memory_space<vmem>>, vector<20x192xf32>
    %cst_78 = arith.constant dense<0.000000e+00> : vector<64x192xf32>
    %49 = tpu.matmul %47, %48, %cst_78 {dimension_numbers = #tpu.dot_dimension_numbers<[1], [0], [0], [1], [0, 0, 1, 1], [], []>} : vector<64x20xf32>, vector<20x192xf32>, vector<64x192xf32> -> vector<64x192xf32>
    %c88 = arith.constant 88 : index
    %c0_79 = arith.constant 0 : index
    %50 = vector.load %arg1[%c88, %c0_79] : memref<384x192xf32, #tpu.memory_space<vmem>>, vector<1x192xf32>
    %51 = vector.broadcast %50 : vector<1x192xf32> to vector<64x192xf32>
    %52 = arith.addf %49, %51 : vector<64x192xf32>
    %c0_80 = arith.constant 0 : index
    %c0_81 = arith.constant 0 : index
    %53 = vector.load %arg4[%c0_80, %c0_81] : memref<64x192xf32, #tpu.memory_space<vmem>>, vector<64x192xf32>
    tpu.vector_store %arg4[%c0_80, %c0_81], %52 {strides = array<i32>} : memref<64x192xf32, #tpu.memory_space<vmem>>, vector<64x192xf32>,
    %c24_82 = arith.constant 24 : index
    %c0_83 = arith.constant 0 : index
    %54 = vector.load %arg1[%c24_82, %c0_83] : memref<384x192xf32, #tpu.memory_space<vmem>>, vector<64x192xf32>
    %c96 = arith.constant 96 : index
    %c0_84 = arith.constant 0 : index
    %55 = vector.load %arg1[%c96, %c0_84] : memref<384x192xf32, #tpu.memory_space<vmem>>, vector<1x64xf32>
    %56 = vector.shape_cast %55 : vector<1x64xf32> to vector<1x64xf32>
    %57 = vector.broadcast %56 : vector<1x64xf32> to vector<2x64xf32>
    %c0_85 = arith.constant 0 : index
    %c0_86 = arith.constant 0 : index
    %58 = vector.load %arg4[%c0_85, %c0_86] : memref<64x192xf32, #tpu.memory_space<vmem>>, vector<2x192xf32>
    %59 = vector.extract_strided_slice %58 {offsets = [0, 0], sizes = [2, 128], strides = [1, 1]} : vector<2x192xf32> to vector<2x128xf32>
    %cst_87 = arith.constant 5.000000e-01 : f32
    %60 = vector.broadcast %cst_87 : f32 to vector<2x128xf32>
    %61 = arith.mulf %60, %59 : vector<2x128xf32>
    %62 = math.tanh %61 : vector<2x128xf32>
    %cst_88 = arith.constant 5.000000e-01 : f32
    %63 = vector.broadcast %cst_88 : f32 to vector<2x128xf32>
    %64 = arith.mulf %63, %62 : vector<2x128xf32>
    %cst_89 = arith.constant 5.000000e-01 : f32
    %65 = vector.broadcast %cst_89 : f32 to vector<2x128xf32>
    %66 = arith.addf %64, %65 : vector<2x128xf32>
    %67 = vector.extract_strided_slice %66 {offsets = [0, 0], sizes = [2, 64], strides = [1, 1]} : vector<2x128xf32> to vector<2x64xf32>
    %68 = vector.extract_strided_slice %66 {offsets = [0, 64], sizes = [2, 64], strides = [1, 1]} : vector<2x128xf32> to vector<2x64xf32>
    %69 = vector.extract_strided_slice %58 {offsets = [0, 128], sizes = [2, 64], strides = [1, 1]} : vector<2x192xf32> to vector<2x64xf32>
    %70 = arith.mulf %67, %57 : vector<2x64xf32>
    %71 = arith.addf %69, %70 : vector<2x64xf32>
    %72 = math.tanh %71 : vector<2x64xf32>
    %cst_90 = arith.constant 1.000000e+00 : f32
    %73 = vector.broadcast %cst_90 : f32 to vector<2x64xf32>
    %74 = arith.subf %73, %68 : vector<2x64xf32>
    %75 = arith.mulf %74, %72 : vector<2x64xf32>
    %76 = vector.extract_strided_slice %75 {offsets = [0, 0], sizes = [2, 32], strides = [1, 1]} : vector<2x64xf32> to vector<2x32xf32>
    %c0_91 = arith.constant 0 : index
    %c0_92 = arith.constant 0 : index
    %77 = vector.load %arg5[%c0_91, %c0_92] : memref<64x64xf32, #tpu.memory_space<vmem>>, vector<2x32xf32>
    tpu.vector_store %arg5[%c0_91, %c0_92], %76 {strides = array<i32>} : memref<64x64xf32, #tpu.memory_space<vmem>>, vector<2x32xf32>,
    %78 = vector.extract_strided_slice %75 {offsets = [0, 32], sizes = [2, 32], strides = [1, 1]} : vector<2x64xf32> to vector<2x32xf32>
    %c56_93 = arith.constant 56 : index
    %c32_94 = arith.constant 32 : index
    %79 = vector.load %arg5[%c56_93, %c32_94] : memref<64x64xf32, #tpu.memory_space<vmem>>, vector<2x32xf32>
    tpu.vector_store %arg5[%c56_93, %c32_94], %78 {strides = array<i32>} : memref<64x64xf32, #tpu.memory_space<vmem>>, vector<2x32xf32>,
    %c8_95 = arith.constant 8 : index
    %c0_96 = arith.constant 0 : index
    %80 = vector.load %arg4[%c8_95, %c0_96] : memref<64x192xf32, #tpu.memory_space<vmem>>, vector<2x192xf32>
    %cst_97 = arith.constant dense<0.000000e+00> : vector<2x192xf32>
    %81 = tpu.matmul %75, %54, %cst_97 {dimension_numbers = #tpu.dot_dimension_numbers<[1], [0], [0], [1], [0, 0, 1, 1], [], []>} : vector<2x64xf32>, vector<64x192xf32>, vector<2x192xf32> -> vector<2x192xf32>
    %82 = vector.extract_strided_slice %80 {offsets = [0, 0], sizes = [2, 128], strides = [1, 1]} : vector<2x192xf32> to vector<2x128xf32>
    %83 = vector.extract_strided_slice %81 {offsets = [0, 0], sizes = [2, 128], strides = [1, 1]} : vector<2x192xf32> to vector<2x128xf32>
    %84 = arith.addf %82, %83 : vector<2x128xf32>
    %cst_98 = arith.constant 5.000000e-01 : f32
    %85 = vector.broadcast %cst_98 : f32 to vector<2x128xf32>
    %86 = arith.mulf %85, %84 : vector<2x128xf32>
    %87 = math.tanh %86 : vector<2x128xf32>
    %cst_99 = arith.constant 5.000000e-01 : f32
    %88 = vector.broadcast %cst_99 : f32 to vector<2x128xf32>
    %89 = arith.mulf %88, %87 : vector<2x128xf32>
    %cst_100 = arith.constant 5.000000e-01 : f32
    %90 = vector.broadcast %cst_100 : f32 to vector<2x128xf32>
    %91 = arith.addf %89, %90 : vector<2x128xf32>
    %92 = vector.extract_strided_slice %91 {offsets = [0, 0], sizes = [2, 64], strides = [1, 1]} : vector<2x128xf32> to vector<2x64xf32>
    %93 = vector.extract_strided_slice %91 {offsets = [0, 64], sizes = [2, 64], strides = [1, 1]} : vector<2x128xf32> to vector<2x64xf32>
    %94 = vector.extract_strided_slice %80 {offsets = [0, 128], sizes = [2, 64], strides = [1, 1]} : vector<2x192xf32> to vector<2x64xf32>
    %95 = vector.extract_strided_slice %81 {offsets = [0, 128], sizes = [2, 64], strides = [1, 1]} : vector<2x192xf32> to vector<2x64xf32>
    %96 = arith.addf %95, %57 : vector<2x64xf32>
    %97 = arith.mulf %92, %96 : vector<2x64xf32>
    %98 = arith.addf %94, %97 : vector<2x64xf32>
    %99 = math.tanh %98 : vector<2x64xf32>
    %cst_101 = arith.constant 1.000000e+00 : f32
    %100 = vector.broadcast %cst_101 : f32 to vector<2x64xf32>
    %101 = arith.subf %100, %93 : vector<2x64xf32>
    %102 = arith.mulf %101, %99 : vector<2x64xf32>
    %103 = arith.mulf %93, %75 : vector<2x64xf32>
    %104 = arith.addf %102, %103 : vector<2x64xf32>
    %105 = vector.extract_strided_slice %104 {offsets = [0, 0], sizes = [2, 32], strides = [1, 1]} : vector<2x64xf32> to vector<2x32xf32>
    %c8_102 = arith.constant 8 : index
    %c0_103 = arith.constant 0 : index
    %106 = vector.load %arg5[%c8_102, %c0_103] : memref<64x64xf32, #tpu.memory_space<vmem>>, vector<2x32xf32>
    tpu.vector_store %arg5[%c8_102, %c0_103], %105 {strides = array<i32>} : memref<64x64xf32, #tpu.memory_space<vmem>>, vector<2x32xf32>,
    %107 = vector.extract_strided_slice %104 {offsets = [0, 32], sizes = [2, 32], strides = [1, 1]} : vector<2x64xf32> to vector<2x32xf32>
    %c48_104 = arith.constant 48 : index
    %c32_105 = arith.constant 32 : index
    %108 = vector.load %arg5[%c48_104, %c32_105] : memref<64x64xf32, #tpu.memory_space<vmem>>, vector<2x32xf32>
    tpu.vector_store %arg5[%c48_104, %c32_105], %107 {strides = array<i32>} : memref<64x64xf32, #tpu.memory_space<vmem>>, vector<2x32xf32>,
    %c16_106 = arith.constant 16 : index
    %c0_107 = arith.constant 0 : index
    %109 = vector.load %arg4[%c16_106, %c0_107] : memref<64x192xf32, #tpu.memory_space<vmem>>, vector<2x192xf32>
    %cst_108 = arith.constant dense<0.000000e+00> : vector<2x192xf32>
    %110 = tpu.matmul %104, %54, %cst_108 {dimension_numbers = #tpu.dot_dimension_numbers<[1], [0], [0], [1], [0, 0, 1, 1], [], []>} : vector<2x64xf32>, vector<64x192xf32>, vector<2x192xf32> -> vector<2x192xf32>
    %111 = vector.extract_strided_slice %109 {offsets = [0, 0], sizes = [2, 128], strides = [1, 1]} : vector<2x192xf32> to vector<2x128xf32>
    %112 = vector.extract_strided_slice %110 {offsets = [0, 0], sizes = [2, 128], strides = [1, 1]} : vector<2x192xf32> to vector<2x128xf32>
    %113 = arith.addf %111, %112 : vector<2x128xf32>
    %cst_109 = arith.constant 5.000000e-01 : f32
    %114 = vector.broadcast %cst_109 : f32 to vector<2x128xf32>
    %115 = arith.mulf %114, %113 : vector<2x128xf32>
    %116 = math.tanh %115 : vector<2x128xf32>
    %cst_110 = arith.constant 5.000000e-01 : f32
    %117 = vector.broadcast %cst_110 : f32 to vector<2x128xf32>
    %118 = arith.mulf %117, %116 : vector<2x128xf32>
    %cst_111 = arith.constant 5.000000e-01 : f32
    %119 = vector.broadcast %cst_111 : f32 to vector<2x128xf32>
    %120 = arith.addf %118, %119 : vector<2x128xf32>
    %121 = vector.extract_strided_slice %120 {offsets = [0, 0], sizes = [2, 64], strides = [1, 1]} : vector<2x128xf32> to vector<2x64xf32>
    %122 = vector.extract_strided_slice %120 {offsets = [0, 64], sizes = [2, 64], strides = [1, 1]} : vector<2x128xf32> to vector<2x64xf32>
    %123 = vector.extract_strided_slice %109 {offsets = [0, 128], sizes = [2, 64], strides = [1, 1]} : vector<2x192xf32> to vector<2x64xf32>
    %124 = vector.extract_strided_slice %110 {offsets = [0, 128], sizes = [2, 64], strides = [1, 1]} : vector<2x192xf32> to vector<2x64xf32>
    %125 = arith.addf %124, %57 : vector<2x64xf32>
    %126 = arith.mulf %121, %125 : vector<2x64xf32>
    %127 = arith.addf %123, %126 : vector<2x64xf32>
    %128 = math.tanh %127 : vector<2x64xf32>
    %cst_112 = arith.constant 1.000000e+00 : f32
    %129 = vector.broadcast %cst_112 : f32 to vector<2x64xf32>
    %130 = arith.subf %129, %122 : vector<2x64xf32>
    %131 = arith.mulf %130, %128 : vector<2x64xf32>
    %132 = arith.mulf %122, %104 : vector<2x64xf32>
    %133 = arith.addf %131, %132 : vector<2x64xf32>
    %134 = vector.extract_strided_slice %133 {offsets = [0, 0], sizes = [2, 32], strides = [1, 1]} : vector<2x64xf32> to vector<2x32xf32>
    %c16_113 = arith.constant 16 : index
    %c0_114 = arith.constant 0 : index
    %135 = vector.load %arg5[%c16_113, %c0_114] : memref<64x64xf32, #tpu.memory_space<vmem>>, vector<2x32xf32>
    tpu.vector_store %arg5[%c16_113, %c0_114], %134 {strides = array<i32>} : memref<64x64xf32, #tpu.memory_space<vmem>>, vector<2x32xf32>,
    %136 = vector.extract_strided_slice %133 {offsets = [0, 32], sizes = [2, 32], strides = [1, 1]} : vector<2x64xf32> to vector<2x32xf32>
    %c40_115 = arith.constant 40 : index
    %c32_116 = arith.constant 32 : index
    %137 = vector.load %arg5[%c40_115, %c32_116] : memref<64x64xf32, #tpu.memory_space<vmem>>, vector<2x32xf32>
    tpu.vector_store %arg5[%c40_115, %c32_116], %136 {strides = array<i32>} : memref<64x64xf32, #tpu.memory_space<vmem>>, vector<2x32xf32>,
    %c24_117 = arith.constant 24 : index
    %c0_118 = arith.constant 0 : index
    %138 = vector.load %arg4[%c24_117, %c0_118] : memref<64x192xf32, #tpu.memory_space<vmem>>, vector<2x192xf32>
    %cst_119 = arith.constant dense<0.000000e+00> : vector<2x192xf32>
    %139 = tpu.matmul %133, %54, %cst_119 {dimension_numbers = #tpu.dot_dimension_numbers<[1], [0], [0], [1], [0, 0, 1, 1], [], []>} : vector<2x64xf32>, vector<64x192xf32>, vector<2x192xf32> -> vector<2x192xf32>
    %140 = vector.extract_strided_slice %138 {offsets = [0, 0], sizes = [2, 128], strides = [1, 1]} : vector<2x192xf32> to vector<2x128xf32>
    %141 = vector.extract_strided_slice %139 {offsets = [0, 0], sizes = [2, 128], strides = [1, 1]} : vector<2x192xf32> to vector<2x128xf32>
    %142 = arith.addf %140, %141 : vector<2x128xf32>
    %cst_120 = arith.constant 5.000000e-01 : f32
    %143 = vector.broadcast %cst_120 : f32 to vector<2x128xf32>
    %144 = arith.mulf %143, %142 : vector<2x128xf32>
    %145 = math.tanh %144 : vector<2x128xf32>
    %cst_121 = arith.constant 5.000000e-01 : f32
    %146 = vector.broadcast %cst_121 : f32 to vector<2x128xf32>
    %147 = arith.mulf %146, %145 : vector<2x128xf32>
    %cst_122 = arith.constant 5.000000e-01 : f32
    %148 = vector.broadcast %cst_122 : f32 to vector<2x128xf32>
    %149 = arith.addf %147, %148 : vector<2x128xf32>
    %150 = vector.extract_strided_slice %149 {offsets = [0, 0], sizes = [2, 64], strides = [1, 1]} : vector<2x128xf32> to vector<2x64xf32>
    %151 = vector.extract_strided_slice %149 {offsets = [0, 64], sizes = [2, 64], strides = [1, 1]} : vector<2x128xf32> to vector<2x64xf32>
    %152 = vector.extract_strided_slice %138 {offsets = [0, 128], sizes = [2, 64], strides = [1, 1]} : vector<2x192xf32> to vector<2x64xf32>
    %153 = vector.extract_strided_slice %139 {offsets = [0, 128], sizes = [2, 64], strides = [1, 1]} : vector<2x192xf32> to vector<2x64xf32>
    %154 = arith.addf %153, %57 : vector<2x64xf32>
    %155 = arith.mulf %150, %154 : vector<2x64xf32>
    %156 = arith.addf %152, %155 : vector<2x64xf32>
    %157 = math.tanh %156 : vector<2x64xf32>
    %cst_123 = arith.constant 1.000000e+00 : f32
    %158 = vector.broadcast %cst_123 : f32 to vector<2x64xf32>
    %159 = arith.subf %158, %151 : vector<2x64xf32>
    %160 = arith.mulf %159, %157 : vector<2x64xf32>
    %161 = arith.mulf %151, %133 : vector<2x64xf32>
    %162 = arith.addf %160, %161 : vector<2x64xf32>
    %163 = vector.extract_strided_slice %162 {offsets = [0, 0], sizes = [2, 32], strides = [1, 1]} : vector<2x64xf32> to vector<2x32xf32>
    %c24_124 = arith.constant 24 : index
    %c0_125 = arith.constant 0 : index
    %164 = vector.load %arg5[%c24_124, %c0_125] : memref<64x64xf32, #tpu.memory_space<vmem>>, vector<2x32xf32>
    tpu.vector_store %arg5[%c24_124, %c0_125], %163 {strides = array<i32>} : memref<64x64xf32, #tpu.memory_space<vmem>>, vector<2x32xf32>,
    %165 = vector.extract_strided_slice %162 {offsets = [0, 32], sizes = [2, 32], strides = [1, 1]} : vector<2x64xf32> to vector<2x32xf32>
    %c32_126 = arith.constant 32 : index
    %c32_127 = arith.constant 32 : index
    %166 = vector.load %arg5[%c32_126, %c32_127] : memref<64x64xf32, #tpu.memory_space<vmem>>, vector<2x32xf32>
    tpu.vector_store %arg5[%c32_126, %c32_127], %165 {strides = array<i32>} : memref<64x64xf32, #tpu.memory_space<vmem>>, vector<2x32xf32>,
    %c32_128 = arith.constant 32 : index
    %c0_129 = arith.constant 0 : index
    %167 = vector.load %arg4[%c32_128, %c0_129] : memref<64x192xf32, #tpu.memory_space<vmem>>, vector<2x192xf32>
    %cst_130 = arith.constant dense<0.000000e+00> : vector<2x192xf32>
    %168 = tpu.matmul %162, %54, %cst_130 {dimension_numbers = #tpu.dot_dimension_numbers<[1], [0], [0], [1], [0, 0, 1, 1], [], []>} : vector<2x64xf32>, vector<64x192xf32>, vector<2x192xf32> -> vector<2x192xf32>
    %169 = vector.extract_strided_slice %167 {offsets = [0, 0], sizes = [2, 128], strides = [1, 1]} : vector<2x192xf32> to vector<2x128xf32>
    %170 = vector.extract_strided_slice %168 {offsets = [0, 0], sizes = [2, 128], strides = [1, 1]} : vector<2x192xf32> to vector<2x128xf32>
    %171 = arith.addf %169, %170 : vector<2x128xf32>
    %cst_131 = arith.constant 5.000000e-01 : f32
    %172 = vector.broadcast %cst_131 : f32 to vector<2x128xf32>
    %173 = arith.mulf %172, %171 : vector<2x128xf32>
    %174 = math.tanh %173 : vector<2x128xf32>
    %cst_132 = arith.constant 5.000000e-01 : f32
    %175 = vector.broadcast %cst_132 : f32 to vector<2x128xf32>
    %176 = arith.mulf %175, %174 : vector<2x128xf32>
    %cst_133 = arith.constant 5.000000e-01 : f32
    %177 = vector.broadcast %cst_133 : f32 to vector<2x128xf32>
    %178 = arith.addf %176, %177 : vector<2x128xf32>
    %179 = vector.extract_strided_slice %178 {offsets = [0, 0], sizes = [2, 64], strides = [1, 1]} : vector<2x128xf32> to vector<2x64xf32>
    %180 = vector.extract_strided_slice %178 {offsets = [0, 64], sizes = [2, 64], strides = [1, 1]} : vector<2x128xf32> to vector<2x64xf32>
    %181 = vector.extract_strided_slice %167 {offsets = [0, 128], sizes = [2, 64], strides = [1, 1]} : vector<2x192xf32> to vector<2x64xf32>
    %182 = vector.extract_strided_slice %168 {offsets = [0, 128], sizes = [2, 64], strides = [1, 1]} : vector<2x192xf32> to vector<2x64xf32>
    %183 = arith.addf %182, %57 : vector<2x64xf32>
    %184 = arith.mulf %179, %183 : vector<2x64xf32>
    %185 = arith.addf %181, %184 : vector<2x64xf32>
    %186 = math.tanh %185 : vector<2x64xf32>
    %cst_134 = arith.constant 1.000000e+00 : f32
    %187 = vector.broadcast %cst_134 : f32 to vector<2x64xf32>
    %188 = arith.subf %187, %180 : vector<2x64xf32>
    %189 = arith.mulf %188, %186 : vector<2x64xf32>
    %190 = arith.mulf %180, %162 : vector<2x64xf32>
    %191 = arith.addf %189, %190 : vector<2x64xf32>
    %192 = vector.extract_strided_slice %191 {offsets = [0, 0], sizes = [2, 32], strides = [1, 1]} : vector<2x64xf32> to vector<2x32xf32>
    %c32_135 = arith.constant 32 : index
    %c0_136 = arith.constant 0 : index
    %193 = vector.load %arg5[%c32_135, %c0_136] : memref<64x64xf32, #tpu.memory_space<vmem>>, vector<2x32xf32>
    tpu.vector_store %arg5[%c32_135, %c0_136], %192 {strides = array<i32>} : memref<64x64xf32, #tpu.memory_space<vmem>>, vector<2x32xf32>,
    %194 = vector.extract_strided_slice %191 {offsets = [0, 32], sizes = [2, 32], strides = [1, 1]} : vector<2x64xf32> to vector<2x32xf32>
    %c24_137 = arith.constant 24 : index
    %c32_138 = arith.constant 32 : index
    %195 = vector.load %arg5[%c24_137, %c32_138] : memref<64x64xf32, #tpu.memory_space<vmem>>, vector<2x32xf32>
    tpu.vector_store %arg5[%c24_137, %c32_138], %194 {strides = array<i32>} : memref<64x64xf32, #tpu.memory_space<vmem>>, vector<2x32xf32>,
    %c40_139 = arith.constant 40 : index
    %c0_140 = arith.constant 0 : index
    %196 = vector.load %arg4[%c40_139, %c0_140] : memref<64x192xf32, #tpu.memory_space<vmem>>, vector<2x192xf32>
    %cst_141 = arith.constant dense<0.000000e+00> : vector<2x192xf32>
    %197 = tpu.matmul %191, %54, %cst_141 {dimension_numbers = #tpu.dot_dimension_numbers<[1], [0], [0], [1], [0, 0, 1, 1], [], []>} : vector<2x64xf32>, vector<64x192xf32>, vector<2x192xf32> -> vector<2x192xf32>
    %198 = vector.extract_strided_slice %196 {offsets = [0, 0], sizes = [2, 128], strides = [1, 1]} : vector<2x192xf32> to vector<2x128xf32>
    %199 = vector.extract_strided_slice %197 {offsets = [0, 0], sizes = [2, 128], strides = [1, 1]} : vector<2x192xf32> to vector<2x128xf32>
    %200 = arith.addf %198, %199 : vector<2x128xf32>
    %cst_142 = arith.constant 5.000000e-01 : f32
    %201 = vector.broadcast %cst_142 : f32 to vector<2x128xf32>
    %202 = arith.mulf %201, %200 : vector<2x128xf32>
    %203 = math.tanh %202 : vector<2x128xf32>
    %cst_143 = arith.constant 5.000000e-01 : f32
    %204 = vector.broadcast %cst_143 : f32 to vector<2x128xf32>
    %205 = arith.mulf %204, %203 : vector<2x128xf32>
    %cst_144 = arith.constant 5.000000e-01 : f32
    %206 = vector.broadcast %cst_144 : f32 to vector<2x128xf32>
    %207 = arith.addf %205, %206 : vector<2x128xf32>
    %208 = vector.extract_strided_slice %207 {offsets = [0, 0], sizes = [2, 64], strides = [1, 1]} : vector<2x128xf32> to vector<2x64xf32>
    %209 = vector.extract_strided_slice %207 {offsets = [0, 64], sizes = [2, 64], strides = [1, 1]} : vector<2x128xf32> to vector<2x64xf32>
    %210 = vector.extract_strided_slice %196 {offsets = [0, 128], sizes = [2, 64], strides = [1, 1]} : vector<2x192xf32> to vector<2x64xf32>
    %211 = vector.extract_strided_slice %197 {offsets = [0, 128], sizes = [2, 64], strides = [1, 1]} : vector<2x192xf32> to vector<2x64xf32>
    %212 = arith.addf %211, %57 : vector<2x64xf32>
    %213 = arith.mulf %208, %212 : vector<2x64xf32>
    %214 = arith.addf %210, %213 : vector<2x64xf32>
    %215 = math.tanh %214 : vector<2x64xf32>
    %cst_145 = arith.constant 1.000000e+00 : f32
    %216 = vector.broadcast %cst_145 : f32 to vector<2x64xf32>
    %217 = arith.subf %216, %209 : vector<2x64xf32>
    %218 = arith.mulf %217, %215 : vector<2x64xf32>
    %219 = arith.mulf %209, %191 : vector<2x64xf32>
    %220 = arith.addf %218, %219 : vector<2x64xf32>
    %221 = vector.extract_strided_slice %220 {offsets = [0, 0], sizes = [2, 32], strides = [1, 1]} : vector<2x64xf32> to vector<2x32xf32>
    %c40_146 = arith.constant 40 : index
    %c0_147 = arith.constant 0 : index
    %222 = vector.load %arg5[%c40_146, %c0_147] : memref<64x64xf32, #tpu.memory_space<vmem>>, vector<2x32xf32>
    tpu.vector_store %arg5[%c40_146, %c0_147], %221 {strides = array<i32>} : memref<64x64xf32, #tpu.memory_space<vmem>>, vector<2x32xf32>,
    %223 = vector.extract_strided_slice %220 {offsets = [0, 32], sizes = [2, 32], strides = [1, 1]} : vector<2x64xf32> to vector<2x32xf32>
    %c16_148 = arith.constant 16 : index
    %c32_149 = arith.constant 32 : index
    %224 = vector.load %arg5[%c16_148, %c32_149] : memref<64x64xf32, #tpu.memory_space<vmem>>, vector<2x32xf32>
    tpu.vector_store %arg5[%c16_148, %c32_149], %223 {strides = array<i32>} : memref<64x64xf32, #tpu.memory_space<vmem>>, vector<2x32xf32>,
    %c48_150 = arith.constant 48 : index
    %c0_151 = arith.constant 0 : index
    %225 = vector.load %arg4[%c48_150, %c0_151] : memref<64x192xf32, #tpu.memory_space<vmem>>, vector<2x192xf32>
    %cst_152 = arith.constant dense<0.000000e+00> : vector<2x192xf32>
    %226 = tpu.matmul %220, %54, %cst_152 {dimension_numbers = #tpu.dot_dimension_numbers<[1], [0], [0], [1], [0, 0, 1, 1], [], []>} : vector<2x64xf32>, vector<64x192xf32>, vector<2x192xf32> -> vector<2x192xf32>
    %227 = vector.extract_strided_slice %225 {offsets = [0, 0], sizes = [2, 128], strides = [1, 1]} : vector<2x192xf32> to vector<2x128xf32>
    %228 = vector.extract_strided_slice %226 {offsets = [0, 0], sizes = [2, 128], strides = [1, 1]} : vector<2x192xf32> to vector<2x128xf32>
    %229 = arith.addf %227, %228 : vector<2x128xf32>
    %cst_153 = arith.constant 5.000000e-01 : f32
    %230 = vector.broadcast %cst_153 : f32 to vector<2x128xf32>
    %231 = arith.mulf %230, %229 : vector<2x128xf32>
    %232 = math.tanh %231 : vector<2x128xf32>
    %cst_154 = arith.constant 5.000000e-01 : f32
    %233 = vector.broadcast %cst_154 : f32 to vector<2x128xf32>
    %234 = arith.mulf %233, %232 : vector<2x128xf32>
    %cst_155 = arith.constant 5.000000e-01 : f32
    %235 = vector.broadcast %cst_155 : f32 to vector<2x128xf32>
    %236 = arith.addf %234, %235 : vector<2x128xf32>
    %237 = vector.extract_strided_slice %236 {offsets = [0, 0], sizes = [2, 64], strides = [1, 1]} : vector<2x128xf32> to vector<2x64xf32>
    %238 = vector.extract_strided_slice %236 {offsets = [0, 64], sizes = [2, 64], strides = [1, 1]} : vector<2x128xf32> to vector<2x64xf32>
    %239 = vector.extract_strided_slice %225 {offsets = [0, 128], sizes = [2, 64], strides = [1, 1]} : vector<2x192xf32> to vector<2x64xf32>
    %240 = vector.extract_strided_slice %226 {offsets = [0, 128], sizes = [2, 64], strides = [1, 1]} : vector<2x192xf32> to vector<2x64xf32>
    %241 = arith.addf %240, %57 : vector<2x64xf32>
    %242 = arith.mulf %237, %241 : vector<2x64xf32>
    %243 = arith.addf %239, %242 : vector<2x64xf32>
    %244 = math.tanh %243 : vector<2x64xf32>
    %cst_156 = arith.constant 1.000000e+00 : f32
    %245 = vector.broadcast %cst_156 : f32 to vector<2x64xf32>
    %246 = arith.subf %245, %238 : vector<2x64xf32>
    %247 = arith.mulf %246, %244 : vector<2x64xf32>
    %248 = arith.mulf %238, %220 : vector<2x64xf32>
    %249 = arith.addf %247, %248 : vector<2x64xf32>
    %250 = vector.extract_strided_slice %249 {offsets = [0, 0], sizes = [2, 32], strides = [1, 1]} : vector<2x64xf32> to vector<2x32xf32>
    %c48_157 = arith.constant 48 : index
    %c0_158 = arith.constant 0 : index
    %251 = vector.load %arg5[%c48_157, %c0_158] : memref<64x64xf32, #tpu.memory_space<vmem>>, vector<2x32xf32>
    tpu.vector_store %arg5[%c48_157, %c0_158], %250 {strides = array<i32>} : memref<64x64xf32, #tpu.memory_space<vmem>>, vector<2x32xf32>,
    %252 = vector.extract_strided_slice %249 {offsets = [0, 32], sizes = [2, 32], strides = [1, 1]} : vector<2x64xf32> to vector<2x32xf32>
    %c8_159 = arith.constant 8 : index
    %c32_160 = arith.constant 32 : index
    %253 = vector.load %arg5[%c8_159, %c32_160] : memref<64x64xf32, #tpu.memory_space<vmem>>, vector<2x32xf32>
    tpu.vector_store %arg5[%c8_159, %c32_160], %252 {strides = array<i32>} : memref<64x64xf32, #tpu.memory_space<vmem>>, vector<2x32xf32>,
    %c56_161 = arith.constant 56 : index
    %c0_162 = arith.constant 0 : index
    %254 = vector.load %arg4[%c56_161, %c0_162] : memref<64x192xf32, #tpu.memory_space<vmem>>, vector<2x192xf32>
    %cst_163 = arith.constant dense<0.000000e+00> : vector<2x192xf32>
    %255 = tpu.matmul %249, %54, %cst_163 {dimension_numbers = #tpu.dot_dimension_numbers<[1], [0], [0], [1], [0, 0, 1, 1], [], []>} : vector<2x64xf32>, vector<64x192xf32>, vector<2x192xf32> -> vector<2x192xf32>
    %256 = vector.extract_strided_slice %254 {offsets = [0, 0], sizes = [2, 128], strides = [1, 1]} : vector<2x192xf32> to vector<2x128xf32>
    %257 = vector.extract_strided_slice %255 {offsets = [0, 0], sizes = [2, 128], strides = [1, 1]} : vector<2x192xf32> to vector<2x128xf32>
    %258 = arith.addf %256, %257 : vector<2x128xf32>
    %cst_164 = arith.constant 5.000000e-01 : f32
    %259 = vector.broadcast %cst_164 : f32 to vector<2x128xf32>
    %260 = arith.mulf %259, %258 : vector<2x128xf32>
    %261 = math.tanh %260 : vector<2x128xf32>
    %cst_165 = arith.constant 5.000000e-01 : f32
    %262 = vector.broadcast %cst_165 : f32 to vector<2x128xf32>
    %263 = arith.mulf %262, %261 : vector<2x128xf32>
    %cst_166 = arith.constant 5.000000e-01 : f32
    %264 = vector.broadcast %cst_166 : f32 to vector<2x128xf32>
    %265 = arith.addf %263, %264 : vector<2x128xf32>
    %266 = vector.extract_strided_slice %265 {offsets = [0, 0], sizes = [2, 64], strides = [1, 1]} : vector<2x128xf32> to vector<2x64xf32>
    %267 = vector.extract_strided_slice %265 {offsets = [0, 64], sizes = [2, 64], strides = [1, 1]} : vector<2x128xf32> to vector<2x64xf32>
    %268 = vector.extract_strided_slice %254 {offsets = [0, 128], sizes = [2, 64], strides = [1, 1]} : vector<2x192xf32> to vector<2x64xf32>
    %269 = vector.extract_strided_slice %255 {offsets = [0, 128], sizes = [2, 64], strides = [1, 1]} : vector<2x192xf32> to vector<2x64xf32>
    %270 = arith.addf %269, %57 : vector<2x64xf32>
    %271 = arith.mulf %266, %270 : vector<2x64xf32>
    %272 = arith.addf %268, %271 : vector<2x64xf32>
    %273 = math.tanh %272 : vector<2x64xf32>
    %cst_167 = arith.constant 1.000000e+00 : f32
    %274 = vector.broadcast %cst_167 : f32 to vector<2x64xf32>
    %275 = arith.subf %274, %267 : vector<2x64xf32>
    %276 = arith.mulf %275, %273 : vector<2x64xf32>
    %277 = arith.mulf %267, %249 : vector<2x64xf32>
    %278 = arith.addf %276, %277 : vector<2x64xf32>
    %279 = vector.extract_strided_slice %278 {offsets = [0, 0], sizes = [2, 32], strides = [1, 1]} : vector<2x64xf32> to vector<2x32xf32>
    %c56_168 = arith.constant 56 : index
    %c0_169 = arith.constant 0 : index
    %280 = vector.load %arg5[%c56_168, %c0_169] : memref<64x64xf32, #tpu.memory_space<vmem>>, vector<2x32xf32>
    tpu.vector_store %arg5[%c56_168, %c0_169], %279 {strides = array<i32>} : memref<64x64xf32, #tpu.memory_space<vmem>>, vector<2x32xf32>,
    %281 = vector.extract_strided_slice %278 {offsets = [0, 32], sizes = [2, 32], strides = [1, 1]} : vector<2x64xf32> to vector<2x32xf32>
    %c0_170 = arith.constant 0 : index
    %c32_171 = arith.constant 32 : index
    %282 = vector.load %arg5[%c0_170, %c32_171] : memref<64x64xf32, #tpu.memory_space<vmem>>, vector<2x32xf32>
    tpu.vector_store %arg5[%c0_170, %c32_171], %281 {strides = array<i32>} : memref<64x64xf32, #tpu.memory_space<vmem>>, vector<2x32xf32>,
    %c0_172 = arith.constant 0 : index
    %c0_173 = arith.constant 0 : index
    %283 = vector.load %arg5[%c0_172, %c0_173] : memref<64x64xf32, #tpu.memory_space<vmem>>, vector<64x64xf32>
    %284 = vector.extract_strided_slice %283 {offsets = [0, 0], sizes = [2, 64], strides = [1, 1]} : vector<64x64xf32> to vector<2x64xf32>
    %c104 = arith.constant 104 : index
    %c0_174 = arith.constant 0 : index
    %285 = vector.load %arg1[%c104, %c0_174] : memref<384x192xf32, #tpu.memory_space<vmem>>, vector<64x96xf32>
    %cst_175 = arith.constant dense<0.000000e+00> : vector<2x96xf32>
    %286 = tpu.matmul %284, %285, %cst_175 {dimension_numbers = #tpu.dot_dimension_numbers<[1], [0], [0], [1], [0, 0, 1, 1], [], []>} : vector<2x64xf32>, vector<64x96xf32>, vector<2x96xf32> -> vector<2x96xf32>
    %c168 = arith.constant 168 : index
    %c0_176 = arith.constant 0 : index
    %287 = vector.load %arg1[%c168, %c0_176] : memref<384x192xf32, #tpu.memory_space<vmem>>, vector<1x96xf32>
    %288 = vector.broadcast %287 : vector<1x96xf32> to vector<2x96xf32>
    %289 = arith.addf %286, %288 : vector<2x96xf32>
    %290 = vector.extract_strided_slice %289 {offsets = [0, 0], sizes = [2, 64], strides = [1, 1]} : vector<2x96xf32> to vector<2x64xf32>
    %cst_177 = arith.constant 5.000000e-01 : f32
    %291 = vector.broadcast %cst_177 : f32 to vector<2x64xf32>
    %292 = arith.mulf %291, %290 : vector<2x64xf32>
    %293 = math.tanh %292 : vector<2x64xf32>
    %cst_178 = arith.constant 5.000000e-01 : f32
    %294 = vector.broadcast %cst_178 : f32 to vector<2x64xf32>
    %295 = arith.mulf %294, %293 : vector<2x64xf32>
    %cst_179 = arith.constant 5.000000e-01 : f32
    %296 = vector.broadcast %cst_179 : f32 to vector<2x64xf32>
    %297 = arith.addf %295, %296 : vector<2x64xf32>
    %298 = vector.extract_strided_slice %297 {offsets = [0, 0], sizes = [2, 32], strides = [1, 1]} : vector<2x64xf32> to vector<2x32xf32>
    %299 = vector.extract_strided_slice %297 {offsets = [0, 32], sizes = [2, 32], strides = [1, 1]} : vector<2x64xf32> to vector<2x32xf32>
    %300 = vector.extract_strided_slice %289 {offsets = [0, 64], sizes = [2, 32], strides = [1, 1]} : vector<2x96xf32> to vector<2x32xf32>
    %c176 = arith.constant 176 : index
    %c0_180 = arith.constant 0 : index
    %301 = vector.load %arg1[%c176, %c0_180] : memref<384x192xf32, #tpu.memory_space<vmem>>, vector<1x32xf32>
    %302 = vector.shape_cast %301 : vector<1x32xf32> to vector<1x32xf32>
    %303 = vector.broadcast %302 : vector<1x32xf32> to vector<2x32xf32>
    %304 = arith.mulf %298, %303 : vector<2x32xf32>
    %305 = arith.addf %300, %304 : vector<2x32xf32>
    %306 = math.tanh %305 : vector<2x32xf32>
    %cst_181 = arith.constant 1.000000e+00 : f32
    %307 = vector.broadcast %cst_181 : f32 to vector<2x32xf32>
    %308 = arith.subf %307, %299 : vector<2x32xf32>
    %309 = arith.mulf %308, %306 : vector<2x32xf32>
    %c184 = arith.constant 184 : index
    %c0_182 = arith.constant 0 : index
    %310 = vector.load %arg1[%c184, %c0_182] : memref<384x192xf32, #tpu.memory_space<vmem>>, vector<64x96xf32>
    %cst_183 = arith.constant dense<0.000000e+00> : vector<64x96xf32>
    %311 = tpu.matmul %283, %310, %cst_183 {dimension_numbers = #tpu.dot_dimension_numbers<[1], [0], [0], [1], [0, 0, 1, 1], [], []>} : vector<64x64xf32>, vector<64x96xf32>, vector<64x96xf32> -> vector<64x96xf32>
    %c248 = arith.constant 248 : index
    %c0_184 = arith.constant 0 : index
    %312 = vector.load %arg1[%c248, %c0_184] : memref<384x192xf32, #tpu.memory_space<vmem>>, vector<1x96xf32>
    %313 = vector.broadcast %312 : vector<1x96xf32> to vector<64x96xf32>
    %314 = arith.addf %311, %313 : vector<64x96xf32>
    %c0_185 = arith.constant 0 : index
    %c0_186 = arith.constant 0 : index
    %315 = vector.load %arg4[%c0_185, %c0_186] : memref<64x192xf32, #tpu.memory_space<vmem>>, vector<64x96xf32>
    tpu.vector_store %arg4[%c0_185, %c0_186], %314 {strides = array<i32>} : memref<64x192xf32, #tpu.memory_space<vmem>>, vector<64x96xf32>,
    %c264 = arith.constant 264 : index
    %c0_187 = arith.constant 0 : index
    %316 = vector.load %arg1[%c264, %c0_187] : memref<384x192xf32, #tpu.memory_space<vmem>>, vector<32x96xf32>
    %c256 = arith.constant 256 : index
    %c0_188 = arith.constant 0 : index
    %317 = vector.load %arg1[%c256, %c0_188] : memref<384x192xf32, #tpu.memory_space<vmem>>, vector<1x32xf32>
    %318 = vector.shape_cast %317 : vector<1x32xf32> to vector<1x32xf32>
    %319 = vector.broadcast %318 : vector<1x32xf32> to vector<2x32xf32>
    %c56_189 = arith.constant 56 : index
    %c0_190 = arith.constant 0 : index
    %320 = vector.load %arg4[%c56_189, %c0_190] : memref<64x192xf32, #tpu.memory_space<vmem>>, vector<2x96xf32>
    %321 = vector.extract_strided_slice %320 {offsets = [0, 0], sizes = [2, 64], strides = [1, 1]} : vector<2x96xf32> to vector<2x64xf32>
    %cst_191 = arith.constant 5.000000e-01 : f32
    %322 = vector.broadcast %cst_191 : f32 to vector<2x64xf32>
    %323 = arith.mulf %322, %321 : vector<2x64xf32>
    %324 = math.tanh %323 : vector<2x64xf32>
    %cst_192 = arith.constant 5.000000e-01 : f32
    %325 = vector.broadcast %cst_192 : f32 to vector<2x64xf32>
    %326 = arith.mulf %325, %324 : vector<2x64xf32>
    %cst_193 = arith.constant 5.000000e-01 : f32
    %327 = vector.broadcast %cst_193 : f32 to vector<2x64xf32>
    %328 = arith.addf %326, %327 : vector<2x64xf32>
    %329 = vector.extract_strided_slice %328 {offsets = [0, 0], sizes = [2, 32], strides = [1, 1]} : vector<2x64xf32> to vector<2x32xf32>
    %330 = vector.extract_strided_slice %328 {offsets = [0, 32], sizes = [2, 32], strides = [1, 1]} : vector<2x64xf32> to vector<2x32xf32>
    %331 = vector.extract_strided_slice %320 {offsets = [0, 64], sizes = [2, 32], strides = [1, 1]} : vector<2x96xf32> to vector<2x32xf32>
    %332 = arith.mulf %329, %319 : vector<2x32xf32>
    %333 = arith.addf %331, %332 : vector<2x32xf32>
    %334 = math.tanh %333 : vector<2x32xf32>
    %cst_194 = arith.constant 1.000000e+00 : f32
    %335 = vector.broadcast %cst_194 : f32 to vector<2x32xf32>
    %336 = arith.subf %335, %330 : vector<2x32xf32>
    %337 = arith.mulf %336, %334 : vector<2x32xf32>
    %c48_195 = arith.constant 48 : index
    %c0_196 = arith.constant 0 : index
    %338 = vector.load %arg4[%c48_195, %c0_196] : memref<64x192xf32, #tpu.memory_space<vmem>>, vector<2x96xf32>
    %cst_197 = arith.constant dense<0.000000e+00> : vector<2x96xf32>
    %339 = tpu.matmul %337, %316, %cst_197 {dimension_numbers = #tpu.dot_dimension_numbers<[1], [0], [0], [1], [0, 0, 1, 1], [], []>} : vector<2x32xf32>, vector<32x96xf32>, vector<2x96xf32> -> vector<2x96xf32>
    %340 = vector.extract_strided_slice %338 {offsets = [0, 0], sizes = [2, 64], strides = [1, 1]} : vector<2x96xf32> to vector<2x64xf32>
    %341 = vector.extract_strided_slice %339 {offsets = [0, 0], sizes = [2, 64], strides = [1, 1]} : vector<2x96xf32> to vector<2x64xf32>
    %342 = arith.addf %340, %341 : vector<2x64xf32>
    %cst_198 = arith.constant 5.000000e-01 : f32
    %343 = vector.broadcast %cst_198 : f32 to vector<2x64xf32>
    %344 = arith.mulf %343, %342 : vector<2x64xf32>
    %345 = math.tanh %344 : vector<2x64xf32>
    %cst_199 = arith.constant 5.000000e-01 : f32
    %346 = vector.broadcast %cst_199 : f32 to vector<2x64xf32>
    %347 = arith.mulf %346, %345 : vector<2x64xf32>
    %cst_200 = arith.constant 5.000000e-01 : f32
    %348 = vector.broadcast %cst_200 : f32 to vector<2x64xf32>
    %349 = arith.addf %347, %348 : vector<2x64xf32>
    %350 = vector.extract_strided_slice %349 {offsets = [0, 0], sizes = [2, 32], strides = [1, 1]} : vector<2x64xf32> to vector<2x32xf32>
    %351 = vector.extract_strided_slice %349 {offsets = [0, 32], sizes = [2, 32], strides = [1, 1]} : vector<2x64xf32> to vector<2x32xf32>
    %352 = vector.extract_strided_slice %338 {offsets = [0, 64], sizes = [2, 32], strides = [1, 1]} : vector<2x96xf32> to vector<2x32xf32>
    %353 = vector.extract_strided_slice %339 {offsets = [0, 64], sizes = [2, 32], strides = [1, 1]} : vector<2x96xf32> to vector<2x32xf32>
    %354 = arith.addf %353, %319 : vector<2x32xf32>
    %355 = arith.mulf %350, %354 : vector<2x32xf32>
    %356 = arith.addf %352, %355 : vector<2x32xf32>
    %357 = math.tanh %356 : vector<2x32xf32>
    %cst_201 = arith.constant 1.000000e+00 : f32
    %358 = vector.broadcast %cst_201 : f32 to vector<2x32xf32>
    %359 = arith.subf %358, %351 : vector<2x32xf32>
    %360 = arith.mulf %359, %357 : vector<2x32xf32>
    %361 = arith.mulf %351, %337 : vector<2x32xf32>
    %362 = arith.addf %360, %361 : vector<2x32xf32>
    %c40_202 = arith.constant 40 : index
    %c0_203 = arith.constant 0 : index
    %363 = vector.load %arg4[%c40_202, %c0_203] : memref<64x192xf32, #tpu.memory_space<vmem>>, vector<2x96xf32>
    %cst_204 = arith.constant dense<0.000000e+00> : vector<2x96xf32>
    %364 = tpu.matmul %362, %316, %cst_204 {dimension_numbers = #tpu.dot_dimension_numbers<[1], [0], [0], [1], [0, 0, 1, 1], [], []>} : vector<2x32xf32>, vector<32x96xf32>, vector<2x96xf32> -> vector<2x96xf32>
    %365 = vector.extract_strided_slice %363 {offsets = [0, 0], sizes = [2, 64], strides = [1, 1]} : vector<2x96xf32> to vector<2x64xf32>
    %366 = vector.extract_strided_slice %364 {offsets = [0, 0], sizes = [2, 64], strides = [1, 1]} : vector<2x96xf32> to vector<2x64xf32>
    %367 = arith.addf %365, %366 : vector<2x64xf32>
    %cst_205 = arith.constant 5.000000e-01 : f32
    %368 = vector.broadcast %cst_205 : f32 to vector<2x64xf32>
    %369 = arith.mulf %368, %367 : vector<2x64xf32>
    %370 = math.tanh %369 : vector<2x64xf32>
    %cst_206 = arith.constant 5.000000e-01 : f32
    %371 = vector.broadcast %cst_206 : f32 to vector<2x64xf32>
    %372 = arith.mulf %371, %370 : vector<2x64xf32>
    %cst_207 = arith.constant 5.000000e-01 : f32
    %373 = vector.broadcast %cst_207 : f32 to vector<2x64xf32>
    %374 = arith.addf %372, %373 : vector<2x64xf32>
    %375 = vector.extract_strided_slice %374 {offsets = [0, 0], sizes = [2, 32], strides = [1, 1]} : vector<2x64xf32> to vector<2x32xf32>
    %376 = vector.extract_strided_slice %374 {offsets = [0, 32], sizes = [2, 32], strides = [1, 1]} : vector<2x64xf32> to vector<2x32xf32>
    %377 = vector.extract_strided_slice %363 {offsets = [0, 64], sizes = [2, 32], strides = [1, 1]} : vector<2x96xf32> to vector<2x32xf32>
    %378 = vector.extract_strided_slice %364 {offsets = [0, 64], sizes = [2, 32], strides = [1, 1]} : vector<2x96xf32> to vector<2x32xf32>
    %379 = arith.addf %378, %319 : vector<2x32xf32>
    %380 = arith.mulf %375, %379 : vector<2x32xf32>
    %381 = arith.addf %377, %380 : vector<2x32xf32>
    %382 = math.tanh %381 : vector<2x32xf32>
    %cst_208 = arith.constant 1.000000e+00 : f32
    %383 = vector.broadcast %cst_208 : f32 to vector<2x32xf32>
    %384 = arith.subf %383, %376 : vector<2x32xf32>
    %385 = arith.mulf %384, %382 : vector<2x32xf32>
    %386 = arith.mulf %376, %362 : vector<2x32xf32>
    %387 = arith.addf %385, %386 : vector<2x32xf32>
    %c32_209 = arith.constant 32 : index
    %c0_210 = arith.constant 0 : index
    %388 = vector.load %arg4[%c32_209, %c0_210] : memref<64x192xf32, #tpu.memory_space<vmem>>, vector<2x96xf32>
    %cst_211 = arith.constant dense<0.000000e+00> : vector<2x96xf32>
    %389 = tpu.matmul %387, %316, %cst_211 {dimension_numbers = #tpu.dot_dimension_numbers<[1], [0], [0], [1], [0, 0, 1, 1], [], []>} : vector<2x32xf32>, vector<32x96xf32>, vector<2x96xf32> -> vector<2x96xf32>
    %390 = vector.extract_strided_slice %388 {offsets = [0, 0], sizes = [2, 64], strides = [1, 1]} : vector<2x96xf32> to vector<2x64xf32>
    %391 = vector.extract_strided_slice %389 {offsets = [0, 0], sizes = [2, 64], strides = [1, 1]} : vector<2x96xf32> to vector<2x64xf32>
    %392 = arith.addf %390, %391 : vector<2x64xf32>
    %cst_212 = arith.constant 5.000000e-01 : f32
    %393 = vector.broadcast %cst_212 : f32 to vector<2x64xf32>
    %394 = arith.mulf %393, %392 : vector<2x64xf32>
    %395 = math.tanh %394 : vector<2x64xf32>
    %cst_213 = arith.constant 5.000000e-01 : f32
    %396 = vector.broadcast %cst_213 : f32 to vector<2x64xf32>
    %397 = arith.mulf %396, %395 : vector<2x64xf32>
    %cst_214 = arith.constant 5.000000e-01 : f32
    %398 = vector.broadcast %cst_214 : f32 to vector<2x64xf32>
    %399 = arith.addf %397, %398 : vector<2x64xf32>
    %400 = vector.extract_strided_slice %399 {offsets = [0, 0], sizes = [2, 32], strides = [1, 1]} : vector<2x64xf32> to vector<2x32xf32>
    %401 = vector.extract_strided_slice %399 {offsets = [0, 32], sizes = [2, 32], strides = [1, 1]} : vector<2x64xf32> to vector<2x32xf32>
    %402 = vector.extract_strided_slice %388 {offsets = [0, 64], sizes = [2, 32], strides = [1, 1]} : vector<2x96xf32> to vector<2x32xf32>
    %403 = vector.extract_strided_slice %389 {offsets = [0, 64], sizes = [2, 32], strides = [1, 1]} : vector<2x96xf32> to vector<2x32xf32>
    %404 = arith.addf %403, %319 : vector<2x32xf32>
    %405 = arith.mulf %400, %404 : vector<2x32xf32>
    %406 = arith.addf %402, %405 : vector<2x32xf32>
    %407 = math.tanh %406 : vector<2x32xf32>
    %cst_215 = arith.constant 1.000000e+00 : f32
    %408 = vector.broadcast %cst_215 : f32 to vector<2x32xf32>
    %409 = arith.subf %408, %401 : vector<2x32xf32>
    %410 = arith.mulf %409, %407 : vector<2x32xf32>
    %411 = arith.mulf %401, %387 : vector<2x32xf32>
    %412 = arith.addf %410, %411 : vector<2x32xf32>
    %c24_216 = arith.constant 24 : index
    %c0_217 = arith.constant 0 : index
    %413 = vector.load %arg4[%c24_216, %c0_217] : memref<64x192xf32, #tpu.memory_space<vmem>>, vector<2x96xf32>
    %cst_218 = arith.constant dense<0.000000e+00> : vector<2x96xf32>
    %414 = tpu.matmul %412, %316, %cst_218 {dimension_numbers = #tpu.dot_dimension_numbers<[1], [0], [0], [1], [0, 0, 1, 1], [], []>} : vector<2x32xf32>, vector<32x96xf32>, vector<2x96xf32> -> vector<2x96xf32>
    %415 = vector.extract_strided_slice %413 {offsets = [0, 0], sizes = [2, 64], strides = [1, 1]} : vector<2x96xf32> to vector<2x64xf32>
    %416 = vector.extract_strided_slice %414 {offsets = [0, 0], sizes = [2, 64], strides = [1, 1]} : vector<2x96xf32> to vector<2x64xf32>
    %417 = arith.addf %415, %416 : vector<2x64xf32>
    %cst_219 = arith.constant 5.000000e-01 : f32
    %418 = vector.broadcast %cst_219 : f32 to vector<2x64xf32>
    %419 = arith.mulf %418, %417 : vector<2x64xf32>
    %420 = math.tanh %419 : vector<2x64xf32>
    %cst_220 = arith.constant 5.000000e-01 : f32
    %421 = vector.broadcast %cst_220 : f32 to vector<2x64xf32>
    %422 = arith.mulf %421, %420 : vector<2x64xf32>
    %cst_221 = arith.constant 5.000000e-01 : f32
    %423 = vector.broadcast %cst_221 : f32 to vector<2x64xf32>
    %424 = arith.addf %422, %423 : vector<2x64xf32>
    %425 = vector.extract_strided_slice %424 {offsets = [0, 0], sizes = [2, 32], strides = [1, 1]} : vector<2x64xf32> to vector<2x32xf32>
    %426 = vector.extract_strided_slice %424 {offsets = [0, 32], sizes = [2, 32], strides = [1, 1]} : vector<2x64xf32> to vector<2x32xf32>
    %427 = vector.extract_strided_slice %413 {offsets = [0, 64], sizes = [2, 32], strides = [1, 1]} : vector<2x96xf32> to vector<2x32xf32>
    %428 = vector.extract_strided_slice %414 {offsets = [0, 64], sizes = [2, 32], strides = [1, 1]} : vector<2x96xf32> to vector<2x32xf32>
    %429 = arith.addf %428, %319 : vector<2x32xf32>
    %430 = arith.mulf %425, %429 : vector<2x32xf32>
    %431 = arith.addf %427, %430 : vector<2x32xf32>
    %432 = math.tanh %431 : vector<2x32xf32>
    %cst_222 = arith.constant 1.000000e+00 : f32
    %433 = vector.broadcast %cst_222 : f32 to vector<2x32xf32>
    %434 = arith.subf %433, %426 : vector<2x32xf32>
    %435 = arith.mulf %434, %432 : vector<2x32xf32>
    %436 = arith.mulf %426, %412 : vector<2x32xf32>
    %437 = arith.addf %435, %436 : vector<2x32xf32>
    %c16_223 = arith.constant 16 : index
    %c0_224 = arith.constant 0 : index
    %438 = vector.load %arg4[%c16_223, %c0_224] : memref<64x192xf32, #tpu.memory_space<vmem>>, vector<2x96xf32>
    %cst_225 = arith.constant dense<0.000000e+00> : vector<2x96xf32>
    %439 = tpu.matmul %437, %316, %cst_225 {dimension_numbers = #tpu.dot_dimension_numbers<[1], [0], [0], [1], [0, 0, 1, 1], [], []>} : vector<2x32xf32>, vector<32x96xf32>, vector<2x96xf32> -> vector<2x96xf32>
    %440 = vector.extract_strided_slice %438 {offsets = [0, 0], sizes = [2, 64], strides = [1, 1]} : vector<2x96xf32> to vector<2x64xf32>
    %441 = vector.extract_strided_slice %439 {offsets = [0, 0], sizes = [2, 64], strides = [1, 1]} : vector<2x96xf32> to vector<2x64xf32>
    %442 = arith.addf %440, %441 : vector<2x64xf32>
    %cst_226 = arith.constant 5.000000e-01 : f32
    %443 = vector.broadcast %cst_226 : f32 to vector<2x64xf32>
    %444 = arith.mulf %443, %442 : vector<2x64xf32>
    %445 = math.tanh %444 : vector<2x64xf32>
    %cst_227 = arith.constant 5.000000e-01 : f32
    %446 = vector.broadcast %cst_227 : f32 to vector<2x64xf32>
    %447 = arith.mulf %446, %445 : vector<2x64xf32>
    %cst_228 = arith.constant 5.000000e-01 : f32
    %448 = vector.broadcast %cst_228 : f32 to vector<2x64xf32>
    %449 = arith.addf %447, %448 : vector<2x64xf32>
    %450 = vector.extract_strided_slice %449 {offsets = [0, 0], sizes = [2, 32], strides = [1, 1]} : vector<2x64xf32> to vector<2x32xf32>
    %451 = vector.extract_strided_slice %449 {offsets = [0, 32], sizes = [2, 32], strides = [1, 1]} : vector<2x64xf32> to vector<2x32xf32>
    %452 = vector.extract_strided_slice %438 {offsets = [0, 64], sizes = [2, 32], strides = [1, 1]} : vector<2x96xf32> to vector<2x32xf32>
    %453 = vector.extract_strided_slice %439 {offsets = [0, 64], sizes = [2, 32], strides = [1, 1]} : vector<2x96xf32> to vector<2x32xf32>
    %454 = arith.addf %453, %319 : vector<2x32xf32>
    %455 = arith.mulf %450, %454 : vector<2x32xf32>
    %456 = arith.addf %452, %455 : vector<2x32xf32>
    %457 = math.tanh %456 : vector<2x32xf32>
    %cst_229 = arith.constant 1.000000e+00 : f32
    %458 = vector.broadcast %cst_229 : f32 to vector<2x32xf32>
    %459 = arith.subf %458, %451 : vector<2x32xf32>
    %460 = arith.mulf %459, %457 : vector<2x32xf32>
    %461 = arith.mulf %451, %437 : vector<2x32xf32>
    %462 = arith.addf %460, %461 : vector<2x32xf32>
    %c8_230 = arith.constant 8 : index
    %c0_231 = arith.constant 0 : index
    %463 = vector.load %arg4[%c8_230, %c0_231] : memref<64x192xf32, #tpu.memory_space<vmem>>, vector<2x96xf32>
    %cst_232 = arith.constant dense<0.000000e+00> : vector<2x96xf32>
    %464 = tpu.matmul %462, %316, %cst_232 {dimension_numbers = #tpu.dot_dimension_numbers<[1], [0], [0], [1], [0, 0, 1, 1], [], []>} : vector<2x32xf32>, vector<32x96xf32>, vector<2x96xf32> -> vector<2x96xf32>
    %465 = vector.extract_strided_slice %463 {offsets = [0, 0], sizes = [2, 64], strides = [1, 1]} : vector<2x96xf32> to vector<2x64xf32>
    %466 = vector.extract_strided_slice %464 {offsets = [0, 0], sizes = [2, 64], strides = [1, 1]} : vector<2x96xf32> to vector<2x64xf32>
    %467 = arith.addf %465, %466 : vector<2x64xf32>
    %cst_233 = arith.constant 5.000000e-01 : f32
    %468 = vector.broadcast %cst_233 : f32 to vector<2x64xf32>
    %469 = arith.mulf %468, %467 : vector<2x64xf32>
    %470 = math.tanh %469 : vector<2x64xf32>
    %cst_234 = arith.constant 5.000000e-01 : f32
    %471 = vector.broadcast %cst_234 : f32 to vector<2x64xf32>
    %472 = arith.mulf %471, %470 : vector<2x64xf32>
    %cst_235 = arith.constant 5.000000e-01 : f32
    %473 = vector.broadcast %cst_235 : f32 to vector<2x64xf32>
    %474 = arith.addf %472, %473 : vector<2x64xf32>
    %475 = vector.extract_strided_slice %474 {offsets = [0, 0], sizes = [2, 32], strides = [1, 1]} : vector<2x64xf32> to vector<2x32xf32>
    %476 = vector.extract_strided_slice %474 {offsets = [0, 32], sizes = [2, 32], strides = [1, 1]} : vector<2x64xf32> to vector<2x32xf32>
    %477 = vector.extract_strided_slice %463 {offsets = [0, 64], sizes = [2, 32], strides = [1, 1]} : vector<2x96xf32> to vector<2x32xf32>
    %478 = vector.extract_strided_slice %464 {offsets = [0, 64], sizes = [2, 32], strides = [1, 1]} : vector<2x96xf32> to vector<2x32xf32>
    %479 = arith.addf %478, %319 : vector<2x32xf32>
    %480 = arith.mulf %475, %479 : vector<2x32xf32>
    %481 = arith.addf %477, %480 : vector<2x32xf32>
    %482 = math.tanh %481 : vector<2x32xf32>
    %cst_236 = arith.constant 1.000000e+00 : f32
    %483 = vector.broadcast %cst_236 : f32 to vector<2x32xf32>
    %484 = arith.subf %483, %476 : vector<2x32xf32>
    %485 = arith.mulf %484, %482 : vector<2x32xf32>
    %486 = arith.mulf %476, %462 : vector<2x32xf32>
    %487 = arith.addf %485, %486 : vector<2x32xf32>
    %c0_237 = arith.constant 0 : index
    %c0_238 = arith.constant 0 : index
    %488 = vector.load %arg4[%c0_237, %c0_238] : memref<64x192xf32, #tpu.memory_space<vmem>>, vector<2x96xf32>
    %cst_239 = arith.constant dense<0.000000e+00> : vector<2x96xf32>
    %489 = tpu.matmul %487, %316, %cst_239 {dimension_numbers = #tpu.dot_dimension_numbers<[1], [0], [0], [1], [0, 0, 1, 1], [], []>} : vector<2x32xf32>, vector<32x96xf32>, vector<2x96xf32> -> vector<2x96xf32>
    %490 = vector.extract_strided_slice %488 {offsets = [0, 0], sizes = [2, 64], strides = [1, 1]} : vector<2x96xf32> to vector<2x64xf32>
    %491 = vector.extract_strided_slice %489 {offsets = [0, 0], sizes = [2, 64], strides = [1, 1]} : vector<2x96xf32> to vector<2x64xf32>
    %492 = arith.addf %490, %491 : vector<2x64xf32>
    %cst_240 = arith.constant 5.000000e-01 : f32
    %493 = vector.broadcast %cst_240 : f32 to vector<2x64xf32>
    %494 = arith.mulf %493, %492 : vector<2x64xf32>
    %495 = math.tanh %494 : vector<2x64xf32>
    %cst_241 = arith.constant 5.000000e-01 : f32
    %496 = vector.broadcast %cst_241 : f32 to vector<2x64xf32>
    %497 = arith.mulf %496, %495 : vector<2x64xf32>
    %cst_242 = arith.constant 5.000000e-01 : f32
    %498 = vector.broadcast %cst_242 : f32 to vector<2x64xf32>
    %499 = arith.addf %497, %498 : vector<2x64xf32>
    %500 = vector.extract_strided_slice %499 {offsets = [0, 0], sizes = [2, 32], strides = [1, 1]} : vector<2x64xf32> to vector<2x32xf32>
    %501 = vector.extract_strided_slice %499 {offsets = [0, 32], sizes = [2, 32], strides = [1, 1]} : vector<2x64xf32> to vector<2x32xf32>
    %502 = vector.extract_strided_slice %488 {offsets = [0, 64], sizes = [2, 32], strides = [1, 1]} : vector<2x96xf32> to vector<2x32xf32>
    %503 = vector.extract_strided_slice %489 {offsets = [0, 64], sizes = [2, 32], strides = [1, 1]} : vector<2x96xf32> to vector<2x32xf32>
    %504 = arith.addf %503, %319 : vector<2x32xf32>
    %505 = arith.mulf %500, %504 : vector<2x32xf32>
    %506 = arith.addf %502, %505 : vector<2x32xf32>
    %507 = math.tanh %506 : vector<2x32xf32>
    %cst_243 = arith.constant 1.000000e+00 : f32
    %508 = vector.broadcast %cst_243 : f32 to vector<2x32xf32>
    %509 = arith.subf %508, %501 : vector<2x32xf32>
    %510 = arith.mulf %509, %507 : vector<2x32xf32>
    %511 = arith.mulf %501, %487 : vector<2x32xf32>
    %512 = arith.addf %510, %511 : vector<2x32xf32>
    %c296 = arith.constant 296 : index
    %c0_244 = arith.constant 0 : index
    %513 = vector.load %arg1[%c296, %c0_244] : memref<384x192xf32, #tpu.memory_space<vmem>>, vector<64x3xf32>
    %514 = vector.extract_strided_slice %513 {offsets = [0, 0], sizes = [32, 3], strides = [1, 1]} : vector<64x3xf32> to vector<32x3xf32>
    %cst_245 = arith.constant dense<0.000000e+00> : vector<2x3xf32>
    %515 = tpu.matmul %309, %514, %cst_245 {dimension_numbers = #tpu.dot_dimension_numbers<[1], [0], [0], [1], [0, 0, 1, 1], [], []>} : vector<2x32xf32>, vector<32x3xf32>, vector<2x3xf32> -> vector<2x3xf32>
    %516 = vector.extract_strided_slice %513 {offsets = [32, 0], sizes = [32, 3], strides = [1, 1]} : vector<64x3xf32> to vector<32x3xf32>
    %cst_246 = arith.constant dense<0.000000e+00> : vector<2x3xf32>
    %517 = tpu.matmul %512, %516, %cst_246 {dimension_numbers = #tpu.dot_dimension_numbers<[1], [0], [0], [1], [0, 0, 1, 1], [], []>} : vector<2x32xf32>, vector<32x3xf32>, vector<2x3xf32> -> vector<2x3xf32>
    %518 = arith.addf %515, %517 : vector<2x3xf32>
    %c360 = arith.constant 360 : index
    %c0_247 = arith.constant 0 : index
    %519 = vector.load %arg1[%c360, %c0_247] : memref<384x192xf32, #tpu.memory_space<vmem>>, vector<1x3xf32>
    %520 = vector.broadcast %519 : vector<1x3xf32> to vector<2x3xf32>
    %521 = arith.addf %518, %520 : vector<2x3xf32>
    %c368 = arith.constant 368 : index
    %c0_248 = arith.constant 0 : index
    %522 = vector.load %arg1[%c368, %c0_248] : memref<384x192xf32, #tpu.memory_space<vmem>>, vector<1x3xf32>
    %c376 = arith.constant 376 : index
    %c0_249 = arith.constant 0 : index
    %523 = vector.load %arg1[%c376, %c0_249] : memref<384x192xf32, #tpu.memory_space<vmem>>, vector<1x3xf32>
    %524 = arith.subf %522, %523 : vector<1x3xf32>
    %cst_250 = arith.constant 5.000000e-01 : f32
    %525 = vector.broadcast %cst_250 : f32 to vector<1x3xf32>
    %526 = arith.mulf %524, %525 : vector<1x3xf32>
    %527 = math.tanh %521 : vector<2x3xf32>
    %528 = vector.broadcast %526 : vector<1x3xf32> to vector<2x3xf32>
    %529 = arith.mulf %528, %527 : vector<2x3xf32>
    %530 = arith.addf %522, %523 : vector<1x3xf32>
    %cst_251 = arith.constant 5.000000e-01 : f32
    %531 = vector.broadcast %cst_251 : f32 to vector<1x3xf32>
    %532 = arith.mulf %530, %531 : vector<1x3xf32>
    %533 = vector.broadcast %532 : vector<1x3xf32> to vector<2x3xf32>
    %534 = arith.addf %529, %533 : vector<2x3xf32>
    %c0_252 = arith.constant 0 : index
    %c0_253 = arith.constant 0 : index
    %535 = vector.load %arg2[%c0_252, %c0_253] : memref<2x3xf32, #tpu.memory_space<vmem>>, vector<2x3xf32>
    tpu.vector_store %arg2[%c0_252, %c0_253], %534 {strides = array<i32>} : memref<2x3xf32, #tpu.memory_space<vmem>>, vector<2x3xf32>,
    return
  }
}

</mosaic_0001>

<bundles_post_ra>
// kernel: forward.1
= control target key start
LH: loop header
LB: loop body
LE: loop exit
PB: predicated region body
PF: predicated region fallthrough
CT: control target
= control target key end

     0   :  { %s2785_s11 = smov 10   ;;  %vm38_vm0 = vcmask 41984   ;;  %vm40_vm1 = vcmask 74800   ;;  %v2786_v7 = vmov 0.0   ;;  %vm186_vm2 = vcmask 1043456   ;;  %s3454_s0 = inlined_call_operand.vmem [shape: f32[2,38], index: 0, kind: input, shape index: {}]   ;;  %s3455_s1 = inlined_call_operand.vmem [shape: f32[384,192], index: 1, kind: input, shape index: {}]   ;;  %s3456_s2 = inlined_call_operand.hbm [shape: f32[2,3], index: 2, kind: output, shape index: {}]  }
   0x1   :  { %v2824_v0 = vld [vmem:[%s3454_s0] sm:$0x3]  ;;  %v143_v2 = vld [vmem:[%s3455_s1 + $0x8] sm:$0xff]  ;;  %v145_v3 = vld [vmem:[%s3455_s1 + $0x18] sm:$0xff]  ;;  %12 = vst [vmem:[#allocation2] sm:$0xff] %v2786_v7  ;;  %257 = vmatprep.mubr.f32.mxu0 %v2786_v7  ;;  %430 = vmatprep.mubr.f32.mxu1 %v2786_v7 }
   0x2   :  { %43 = vrot.lane.b32.xlu0 %v2824_v0, %s2785_s11  ;;  %v2830_v1 = vld [vmem:[%s3454_s0] sm:$0x3]  ;;  %v2472_v4 = vpack.c.bf16 %v145_v3, %v143_v2  ;;  %v144_v6 = vld [vmem:[%s3455_s1 + $0x10] sm:$0xff]  ;;  %13 = vst [vmem:[#allocation2 + $0x8] sm:$0xff] %v2786_v7  ;;  %14 = vst [vmem:[#allocation2 + $0x10] sm:$0xff] %v2786_v7 }
   0x3   :  { %v142_v5 = vld [vmem:[%s3455_s1] sm:$0xff]  ;;  %15 = vst [vmem:[#allocation2 + $0x18] sm:$0xff] %v2786_v7  ;;  %16 = vst [vmem:[#allocation2 + $0x20] sm:$0xff] %v2786_v7  ;;  %v147_v9 = vld [vmem:[%s3455_s1 + $0x28] sm:$0xf] }
   0x4   :  { %17 = vst [vmem:[#allocation2 + $0x28] sm:$0xff] %v2786_v7  ;;  %18 = vst [vmem:[#allocation2 + $0x30] sm:$0xff] %v2786_v7  ;;  %v2474_v8 = vpack.c.bf16 %v144_v6, %v142_v5  ;;  %2473 = vmatprep.subr.bf16.mxu0 %v2472_v4 }
   0x5   :  { %19 = vst [vmem:[#allocation2 + $0x38] sm:$0xff] %v2786_v7  ;;  %39 = vst.msk [vmem:[#allocation2] sm:$0x3] %vm38_vm0, %v2824_v0 }
   0x6   :  { %51 = vst.msk [vmem:[#allocation2 + $0x8] sm:$0x3] %vm38_vm0, %v2824_v0  ;;  %63 = vst.msk [vmem:[#allocation2 + $0x10] sm:$0x3] %vm38_vm0, %v2824_v0 }
   0x7   :  { %75 = vst.msk [vmem:[#allocation2 + $0x18] sm:$0x3] %vm38_vm0, %v2824_v0 }
   0x8   :  { %7 = vsyncpa [#allocation7], 0  ;;  %s2787_s24 = smov 110   ;;  %41 = vst.msk [vmem:[#allocation2] sm:$0x3] %vm40_vm1, %v2824_v0  ;;  %2475 = vmatpush1.bf16.msra.mxu0 %v2474_v8  ;;  %vm46_vm3 = vcmask 123984   ;;  %v151_v15 = vlaneseq }
   0x9   :  { %130 = vrot.lane.b32.xlu0 %v2830_v1, %s2787_s24  ;;  %2221 = vmatprep.subr.msk.mxu0 %vm186_vm2, %v147_v9  ;;  %v146_v10 = vld [vmem:[%s3455_s1 + $0x20] sm:$0xf]  ;;  %vm48_vm4 = vcmask 156800   ;;  %vm161_vm5 = vcmask 162816   ;;  %vm20_vm6 = vcmask 523264   ;;  %s2788_s29 = smov 114  }
   0xa   :  { %21 = vst.msk [vmem:[#allocation4] sm:$0xff] %vm20_vm6, %v2786_v7  ;;  %22 = vst.msk [vmem:[#allocation4 + $0x8] sm:$0xff] %vm20_vm6, %v2786_v7  ;;  %v2901_v14 = vld [vmem:[%s3454_s0] sm:$0x3]  ;;  %v152_v16 = vshrl.u32 %v151_v15, 7  ;;  %v323_v35 = vld [vmem:[%s3455_s1 + $0x38] sm:$0xff] }
   0xb   :  { %23 = vst.msk [vmem:[#allocation4 + $0x10] sm:$0xff] %vm20_vm6, %v2786_v7  ;;  %24 = vst.msk [vmem:[#allocation4 + $0x18] sm:$0xff] %vm20_vm6, %v2786_v7  ;;  %v2220_v18 = vld [vmem:[%s3455_s1 + $0xb0] ss:$8 sm:$0x3]  ;;  %v325_v36 = vld [vmem:[%s3455_s1 + $0x48] sm:$0xff] }
   0xc   :  { %2222 = vmatpush1.msk.msra.mxu0 %vm186_vm2, %v146_v10  ;;  %25 = vst.msk [vmem:[#allocation4 + $0x20] sm:$0xff] %vm20_vm6, %v2786_v7  ;;  %26 = vst.msk [vmem:[#allocation4 + $0x28] sm:$0xff] %vm20_vm6, %v2786_v7  ;;  %v153_v17 = vsub.s32 0, %v152_v16  ;;  %v157_v19 = vsub.s32 1, %v152_v16  ;;  %v2917_v30 = vld [vmem:[%s3455_s1 + $0xc0] ss:$0 sm:$0xff]  ;;  %v2929_v38 = vpack.c.bf16 %v325_v36, %v323_v35 }
   0xd   :  { %27 = vst.msk [vmem:[#allocation4 + $0x30] sm:$0xff] %vm20_vm6, %v2786_v7  ;;  %28 = vst.msk [vmem:[#allocation4 + $0x38] sm:$0xff] %vm20_vm6, %v2786_v7  ;;  %118 = vrot.lane.b32.xlu0 %v2901_v14, %s2788_s29  ;;  %v322_v37 = vld [vmem:[%s3455_s1 + $0x30] sm:$0xff]  ;;  %v324_v39 = vld [vmem:[%s3455_s1 + $0x40] sm:$0xff]  ;;  %s2789_s18 = smov 64   ;;  %s2790_s9 = smov 124  }
   0xe   :  { %v2907_v20 = vrot.slane %v2220_v18, %v153_v17  ;;  %v2909_v21 = vrot.slane %v2220_v18, %v157_v19  ;;  %v327_v40 = vld [vmem:[%s3455_s1 + $0x58] sm:$0xff]  ;;  %v329_v41 = vld [vmem:[%s3455_s1 + $0x68] sm:$0xff]  ;;  %v2940_v42 = vpack.c.bf16 %v324_v39, %v322_v37  ;;  %2477 = vmatprep.subr.bf16.mxu1 %v2929_v38  ;;  %2509 = vmatprep.subr.bf16.mxu0 %v2929_v38  ;;  %v2954_v45 = vld [vmem:[%s3454_s0] sm:$0x3]  ;;  %s2791_s16 = smov 120   ;;  %vm358_vm7 = vcmask 254976  }
   0xf   :  { %v2942_v43 = vpack.c.bf16 %v329_v41, %v327_v40  ;;  %v326_v46 = vld [vmem:[%s3455_s1 + $0x50] sm:$0xff]  ;;  %v328_v47 = vld [vmem:[%s3455_s1 + $0x60] sm:$0xff]  ;;  %v331_v48 = vld [vmem:[%s3455_s1 + $0x78] sm:$0xff]  ;;  %vm360_vm8 = vcmask 517376   ;;  %s2792_s20 = smov 118   ;;  %s2793_s23 = smov 116  }
  0x10   :  { %2479 = vmatpush1.bf16.msra.mxu1 %v2940_v42  ;;  %v2965_v49 = vpack.c.bf16 %v328_v47, %v326_v46  ;;  %v333_v50 = vld [vmem:[%s3455_s1 + $0x88] sm:$0xff]  ;;  %v330_v51 = vld [vmem:[%s3455_s1 + $0x70] sm:$0xff]  ;;  %v332_v52 = vld [vmem:[%s3455_s1 + $0x80] sm:$0xff]  ;;  %s2794_s24 = smov 126   ;;  %s2795_s25 = smov 2   ;;  %vm2803_vm9 = vmmov 0  }
  0x11   :  { %2481 = vmatprep.subr.bf16.mxu1 %v2942_v43  ;;  %v2976_v53 = vpack.c.bf16 %v333_v50, %v331_v48  ;;  %v335_v54 = vld [vmem:[%s3455_s1 + $0x98] sm:$0xff]  ;;  %v337_v55 = vld [vmem:[%s3455_s1 + $0xa8] sm:$0xff]  ;;  %v2986_v56 = vpack.c.bf16 %v332_v52, %v330_v51  ;;  %v334_v58 = vld [vmem:[%s3455_s1 + $0x90] sm:$0xff]  ;;  %s2796_s26 = smov 6   ;;  %s2797_s27 = smov 100   ;;  %vm1291_vm10 = vcmask 785408  }
  0x12   :  { %v2989_v57 = vpack.c.bf16 %v337_v55, %v335_v54  ;;  %v336_v59 = vld [vmem:[%s3455_s1 + $0xa0] sm:$0xff]  ;;  %s2798_s30 = smov 122   ;;  %s2799_s3 = smov 112   ;;  %vm1327_vm11 = vcmask 261120   ;;  %vm2204_vm12 = vcmask 17408  }
  0x13   :  { %v3000_v60 = vpack.c.bf16 %v336_v59, %v334_v58  ;;  %v3013_v3 = vld [vmem:[%s3454_s0] sm:$0x3]  ;;  %s2800_s4 = smov 108   ;;  %s2801_s5 = smov 104  }
  0x14   :  { %2483 = vmatpush1.bf16.msra.mxu1 %v2965_v49  ;;  %v74_v39 = vld [vmem:[%s3454_s0] sm:$0x3]  ;;  %s2804_s22 = smov 96  }
  0x15   :  { %2485 = vmatprep.subr.bf16.mxu1 %v2976_v53 }
  0x18   :  { %2487 = vmatpush1.bf16.msra.mxu1 %v2986_v56 }
  0x19   :  { %2489 = vmatprep.subr.bf16.mxu1 %v2989_v57 }
  0x1c   :  { %2491 = vmatpush1.bf16.msra.mxu1 %v3000_v60 }
  0x1d   :  { %2493 = vmatprep.subr.bf16.mxu1 %v2929_v38 }
  0x74   :  { %v2871_v11 = vpop.permute.xlu0 %43 }
  0x75   :  { %47 = vst.msk [vmem:[#allocation2] sm:$0x3] %vm46_vm3, %v2871_v11 }
  0x76   :  { %49 = vst.msk [vmem:[#allocation2 + $0x38] sm:$0x3] %vm48_vm4, %v2871_v11 }
  0x77   :  { %123 = vst.msk [vmem:[#allocation2 + $0x38] sm:$0x3] %vm38_vm0, %v2824_v0 }
  0x7b   :  { %v131_v12 = vpop.permute.xlu0 %130 }
  0x7c   :  { %133 = vst.msk [vmem:[#allocation2] sm:$0x3] %vm48_vm4, %v131_v12 }
  0x7f   :  { %v119_v4 = vpop.permute.xlu0 %118 }
  0x83   :  { %v134_v13 = vld [vmem:[#allocation2] sm:$0xff] }
  0x84   :  { %2223 = vmatmul.mubr.msk.f32.vlgmr.msra.gmra.mrb[0].mxu0 %vm161_vm5, %v134_v13 }
  0x85   :  { %263 = vmatprep.mubr.f32.mxu0 %v2786_v7  ;;  %2511 = vmatpush1.bf16.msra.mxu0 %v2940_v42 }
  0x86   :  { %2513 = vmatprep.subr.bf16.mxu0 %v2942_v43 }
  0x89   :  { %2515 = vmatpush1.bf16.msra.mxu0 %v2965_v49 }
  0x8a   :  { %2517 = vmatprep.subr.bf16.mxu0 %v2976_v53 }
  0x8d   :  { %2519 = vmatpush1.bf16.msra.mxu0 %v2986_v56 }
  0x8e   :  { %2521 = vmatprep.subr.bf16.mxu0 %v2989_v57 }
  0x91   :  { %2523 = vmatpush1.bf16.msra.mxu0 %v3000_v60 }
  0x92   :  { %2541 = vmatprep.subr.bf16.mxu0 %v2929_v38 }
 0x157   :  { %v259_v22 = vpop.f32.mrb[0].mxu0 }
 0x158   :  { %v260_v23 = vadd.f32 %v259_v22, %v2907_v20  ;;  %v261_v24 = vpop.f32.mrb[1].mxu0 }
 0x159   :  { %v262_v25 = vadd.f32 %v261_v24, %v2909_v21 }
 0x15a   :  { %306 = vst [vmem:[#allocation3] sm:$0xff] %v260_v23 }
 0x15b   :  { %307 = vst.msk [vmem:[#allocation3 + $0x8] sm:$0xff] %vm20_vm6, %v262_v25 }
 0x161   :  { %v339_v26 = vld [vmem:[#allocation3] sm:$0x3] }
 0x162   :  { %v341_v27 = vmul.f32 0.5, %v339_v26  ;;  %v340_v33 = vld [vmem:[#allocation3 + $0x8] sm:$0x3] }
 0x164   :  { %2691 = vtanh.f32 %v341_v27 }
 0x16e   :  { %v2692_v28 = vpop.eup %2691 }
 0x16f   :  { %v343_v29 = vmul.f32 0.5, %v2692_v28 }
 0x171   :  { %v344_v31 = vadd.f32 0.5, %v343_v29 }
 0x173   :  { %v345_v32 = vmul.f32 %v344_v31, %v2917_v30  ;;  %v348_v61 = vsub.f32 1.0, %v344_v31  ;;  %v3045_v31 = vld [vmem:[%s3454_s0] sm:$0x3] }
 0x175   :  { %v346_v34 = vadd.f32 %v345_v32, %v340_v33 }
 0x177   :  { %2693 = vtanh.f32 %v346_v34 }
 0x181   :  { %v2694_v44 = vpop.eup %2693 }
 0x182   :  { %350 = vrot.lane.b32.xlu1 %v2694_v44, %s2789_s18 }
 0x186   :  { %53 = vrot.lane.b32.xlu1 %v2954_v45, %s2790_s9 }
 0x1f4   :  { %v351_v62 = vpop.permute.xlu1 %350 }
 0x1f5   :  { %v353_v63 = vmul.f32 %v351_v62, %v348_v61 }
 0x1f7   :  { %355 = vrot.lane.b32.xlu1 %v353_v63, %s2789_s18 }
 0x1f8   :  { %v54_v2 = vpop.permute.xlu1 %53 }
 0x1f9   :  { %56 = vst.msk [vmem:[#allocation2 + $0x8] sm:$0x3] %vm40_vm1, %v54_v2 }
 0x1fa   :  { %57 = vst.msk [vmem:[#allocation2 + $0x8] sm:$0x3] %vm46_vm3, %v2871_v11 }
 0x1fb   :  { %65 = vrot.lane.b32.xlu1 %v3013_v3, %s2791_s16  ;;  %121 = vst.msk [vmem:[#allocation2 + $0x8] sm:$0x3] %vm48_vm4, %v119_v4 }
 0x202   :  { %v135_v5 = vld [vmem:[#allocation2 + $0x8] sm:$0xff] }
 0x203   :  { %2224 = vmatmul.mubr.msk.f32.gmra.mrb[2].mxu0 %vm161_vm5, %v135_v5 }
 0x204   :  { %269 = vmatprep.mubr.f32.mxu0 %v2786_v7 }
 0x269   :  { %v356_v6 = vpop.permute.xlu1 %355 }
 0x26a   :  { %359 = vst.msk [vmem:[#allocation4] sm:$0x3] %vm358_vm7, %v356_v6  ;;  %2231 = vmatmul.mubr.msk.f32.vlgmr.msra.gmra.mrb[0].mxu1 %vm20_vm6, %v356_v6 }
 0x26b   :  { %361 = vst.msk [vmem:[#allocation4 + $0x38] sm:$0x3] %vm360_vm8, %v356_v6  ;;  %2495 = vmatpush1.bf16.msra.mxu1 %v2940_v42  ;;  %528 = vmatprep.mubr.f32.mxu1 %v2786_v7 }
 0x26c   :  { %2497 = vmatprep.subr.bf16.mxu1 %v2942_v43 }
 0x26d   :  { %v66_v8 = vpop.permute.xlu1 %65 }
 0x26e   :  { %68 = vst.msk [vmem:[#allocation2 + $0x10] sm:$0x3] %vm40_vm1, %v66_v8  ;;  %v86_v8 = vld [vmem:[%s3454_s0] sm:$0x3] }
 0x26f   :  { %69 = vst.msk [vmem:[#allocation2 + $0x10] sm:$0x3] %vm46_vm3, %v2871_v11  ;;  %2499 = vmatpush1.bf16.msra.mxu1 %v2965_v49 }
 0x270   :  { %2501 = vmatprep.subr.bf16.mxu1 %v2976_v53 }
 0x273   :  { %2503 = vmatpush1.bf16.msra.mxu1 %v2986_v56 }
 0x274   :  { %2505 = vmatprep.subr.bf16.mxu1 %v2989_v57 }
 0x277   :  { %2507 = vmatpush1.bf16.msra.mxu1 %v3000_v60 }
 0x278   :  { %2525 = vmatprep.subr.bf16.mxu1 %v2929_v38 }
 0x2d6   :  { %v265_v9 = vpop.f32.mrb[2].mxu0 }
 0x2d7   :  { %v266_v10 = vadd.f32 %v265_v9, %v2907_v20  ;;  %v267_v12 = vpop.f32.mrb[3].mxu0 }
 0x2d8   :  { %v268_v13 = vadd.f32 %v267_v12, %v2909_v21 }
 0x2d9   :  { %308 = vst [vmem:[#allocation3 + $0x10] sm:$0xff] %v266_v10 }
 0x2da   :  { %309 = vst.msk [vmem:[#allocation3 + $0x18] sm:$0xff] %vm20_vm6, %v268_v13 }
 0x2e0   :  { %v362_v15 = vld [vmem:[#allocation3 + $0x10] sm:$0x3] }
 0x2e1   :  { %v363_v27 = vld [vmem:[#allocation3 + $0x18] sm:$0x3] }
 0x33d   :  { %v432_v16 = vpop.f32.mrb[0].mxu1 }
 0x33e   :  { %v437_v17 = vadd.f32 %v432_v16, %v362_v15  ;;  %v434_v18 = vpop.f32.mrb[1].mxu1 }
 0x33f   :  { %v442_v25 = vadd.f32 %v434_v18, %v2917_v30 }
 0x340   :  { %v438_v19 = vmul.f32 0.5, %v437_v17 }
 0x342   :  { %2695 = vtanh.f32 %v438_v19 }
 0x34c   :  { %v2696_v22 = vpop.eup %2695 }
 0x34d   :  { %v440_v23 = vmul.f32 0.5, %v2696_v22 }
 0x34f   :  { %v441_v24 = vadd.f32 0.5, %v440_v23 }
 0x351   :  { %v443_v26 = vmul.f32 %v442_v25, %v441_v24  ;;  %v446_v32 = vsub.f32 1.0, %v441_v24  ;;  %v452_v34 = vmul.f32 %v441_v24, %v353_v63 }
 0x353   :  { %v444_v28 = vadd.f32 %v443_v26, %v363_v27 }
 0x355   :  { %2697 = vtanh.f32 %v444_v28 }
 0x35f   :  { %v2698_v29 = vpop.eup %2697 }
 0x360   :  { %448 = vrot.lane.b32.xlu0 %v2698_v29, %s2789_s18 }
 0x364   :  { %106 = vrot.lane.b32.xlu0 %v3045_v31, %s2792_s20  ;;  %s2805_s20 = smov [#allocation6]  }
 0x365   :  { %s2212_s21 = sshll.u32 %s2805_s20, 4  ;;  %s2213_s21 = int_to_ptr.vmem [resolvable:$true] %s2212_s21 }
 0x366   :  { %p2766_p1 = scmp.lt.s32.totalorder %s2213_s21, %s2213_s21 }
 0x3d2   :  { %v449_v33 = vpop.permute.xlu0 %448 }
 0x3d3   :  { %v451_v35 = vmul.f32 %v449_v33, %v446_v32 }
 0x3d5   :  { %v3048_v36 = vadd.f32 %v452_v34, %v451_v35 }
 0x3d6   :  { %v107_v37 = vpop.permute.xlu0 %106 }
 0x3d7   :  { %455 = vrot.lane.b32.xlu1 %v3048_v36, %s2789_s18  ;;  %109 = vst.msk [vmem:[#allocation2 + $0x10] sm:$0x3] %vm48_vm4, %v107_v37 }
 0x3db   :  { %77 = vrot.lane.b32.xlu1 %v74_v39, %s2793_s23 }
 0x3de   :  { %v136_v40 = vld [vmem:[#allocation2 + $0x10] sm:$0xff] }
 0x3df   :  { %82 = vrot.lane.b32.xlu1 %v74_v39, %s2794_s24  ;;  %2225 = vmatmul.mubr.msk.f32.gmra.mrb[4].mxu0 %vm161_vm5, %v136_v40 }
 0x3e0   :  { %275 = vmatprep.mubr.f32.mxu0 %v2786_v7 }
 0x3e3   :  { %70 = vrot.lane.b32.xlu1 %v3013_v3, %s2795_s25 }
 0x3e7   :  { %58 = vrot.lane.b32.xlu1 %v2954_v45, %s2796_s26 }
 0x3eb   :  { %125 = vrot.lane.b32.xlu1 %v2830_v1, %s2797_s27 }
 0x449   :  { %v456_v41 = vpop.permute.xlu1 %455 }
 0x44a   :  { %458 = vst.msk [vmem:[#allocation4 + $0x8] sm:$0x3] %vm358_vm7, %v456_v41  ;;  %2232 = vmatmul.mubr.msk.f32.vlgmr.msra.gmra.mrb[2].mxu1 %vm20_vm6, %v456_v41 }
 0x44b   :  { %459 = vst.msk [vmem:[#allocation4 + $0x30] sm:$0x3] %vm360_vm8, %v456_v41  ;;  %2527 = vmatpush1.bf16.msra.mxu1 %v2940_v42  ;;  %724 = vmatprep.mubr.f32.mxu1 %v2786_v7 }
 0x44c   :  { %2529 = vmatprep.subr.bf16.mxu1 %v2942_v43 }
 0x44d   :  { %v78_v44 = vpop.permute.xlu1 %77 }
 0x44e   :  { %80 = vst.msk [vmem:[#allocation2 + $0x18] sm:$0x3] %vm40_vm1, %v78_v44 }
 0x44f   :  { %81 = vst.msk [vmem:[#allocation2 + $0x18] sm:$0x3] %vm46_vm3, %v2871_v11  ;;  %2531 = vmatpush1.bf16.msra.mxu1 %v2965_v49 }
 0x450   :  { %2533 = vmatprep.subr.bf16.mxu1 %v2976_v53 }
 0x451   :  { %v83_v1 = vpop.permute.xlu1 %82 }
 0x452   :  { %85 = vst.msk [vmem:[#allocation2 + $0x20] sm:$0x3] %vm48_vm4, %v83_v1 }
 0x453   :  { %87 = vst.msk [vmem:[#allocation2 + $0x20] sm:$0x3] %vm38_vm0, %v2824_v0  ;;  %2535 = vmatpush1.bf16.msra.mxu1 %v2986_v56 }
 0x454   :  { %2537 = vmatprep.subr.bf16.mxu1 %v2989_v57 }
 0x455   :  { %v71_v45 = vpop.permute.xlu1 %70 }
 0x456   :  { %73 = vst.msk [vmem:[#allocation2 + $0x28] sm:$0x3] %vm48_vm4, %v71_v45 }
 0x457   :  { %99 = vst.msk [vmem:[#allocation2 + $0x28] sm:$0x3] %vm38_vm0, %v2824_v0  ;;  %2539 = vmatpush1.bf16.msra.mxu1 %v3000_v60 }
 0x458   :  { %2557 = vmatprep.subr.bf16.mxu1 %v2929_v38 }
 0x459   :  { %v59_v46 = vpop.permute.xlu1 %58 }
 0x45a   :  { %61 = vst.msk [vmem:[#allocation2 + $0x30] sm:$0x3] %vm48_vm4, %v59_v46 }
 0x45b   :  { %111 = vst.msk [vmem:[#allocation2 + $0x30] sm:$0x3] %vm38_vm0, %v2824_v0 }
 0x45d   :  { %v126_v47 = vpop.permute.xlu1 %125 }
 0x45e   :  { %128 = vst.msk [vmem:[#allocation2 + $0x38] sm:$0x3] %vm40_vm1, %v126_v47 }
 0x45f   :  { %129 = vst.msk [vmem:[#allocation2 + $0x38] sm:$0x3] %vm46_vm3, %v2871_v11 }
 0x466   :  { %v141_v25 = vld [vmem:[#allocation2 + $0x38] sm:$0xff] }
 0x4b2   :  { %v271_v48 = vpop.f32.mrb[4].mxu0 }
 0x4b3   :  { %v272_v50 = vadd.f32 %v271_v48, %v2907_v20  ;;  %v273_v51 = vpop.f32.mrb[5].mxu0 }
 0x4b4   :  { %v274_v52 = vadd.f32 %v273_v51, %v2909_v21 }
 0x4b5   :  { %310 = vst [vmem:[#allocation3 + $0x20] sm:$0xff] %v272_v50 }
 0x4b6   :  { %311 = vst.msk [vmem:[#allocation3 + $0x28] sm:$0xff] %vm20_vm6, %v274_v52 }
 0x4bc   :  { %v460_v54 = vld [vmem:[#allocation3 + $0x20] sm:$0x3] }
 0x4bd   :  { %v461_v4 = vld [vmem:[#allocation3 + $0x28] sm:$0x3] }
 0x51d   :  { %v530_v55 = vpop.f32.mrb[2].mxu1 }
 0x51e   :  { %v535_v58 = vadd.f32 %v530_v55, %v460_v54  ;;  %v532_v59 = vpop.f32.mrb[3].mxu1 }
 0x51f   :  { %v540_v2 = vadd.f32 %v532_v59, %v2917_v30 }
 0x520   :  { %v536_v0 = vmul.f32 0.5, %v535_v58 }
 0x522   :  { %2699 = vtanh.f32 %v536_v0 }
 0x52c   :  { %v2700_v61 = vpop.eup %2699 }
 0x52d   :  { %v538_v62 = vmul.f32 0.5, %v2700_v61 }
 0x52f   :  { %v539_v63 = vadd.f32 0.5, %v538_v62 }
 0x531   :  { %v541_v3 = vmul.f32 %v540_v2, %v539_v63  ;;  %v544_v9 = vsub.f32 1.0, %v539_v63  ;;  %v550_v12 = vmul.f32 %v539_v63, %v3048_v36 }
 0x533   :  { %v542_v5 = vadd.f32 %v541_v3, %v461_v4 }
 0x535   :  { %2701 = vtanh.f32 %v542_v5 }
 0x53f   :  { %v2702_v6 = vpop.eup %2701 }
 0x540   :  { %546 = vrot.lane.b32.xlu0 %v2702_v6, %s2789_s18 }
 0x544   :  { %94 = vrot.lane.b32.xlu0 %v86_v8, %s2798_s30 }
 0x548   :  { %89 = vrot.lane.b32.xlu0 %v86_v8, %s2799_s3 }
 0x54c   :  { %101 = vrot.lane.b32.xlu0 %v3045_v31, %s2800_s4 }
 0x550   :  { %113 = vrot.lane.b32.xlu0 %v2901_v14, %s2801_s5 }
 0x5b2   :  { %v547_v10 = vpop.permute.xlu0 %546 }
 0x5b3   :  { %v549_v13 = vmul.f32 %v547_v10, %v544_v9 }
 0x5b5   :  { %v3099_v15 = vadd.f32 %v550_v12, %v549_v13 }
 0x5b6   :  { %v95_v16 = vpop.permute.xlu0 %94 }
 0x5b7   :  { %97 = vst.msk [vmem:[#allocation2 + $0x18] sm:$0x3] %vm48_vm4, %v95_v16  ;;  %553 = vrot.lane.b32.xlu0 %v3099_v15, %s2789_s18 }
 0x5ba   :  { %v90_v17 = vpop.permute.xlu0 %89 }
 0x5bb   :  { %92 = vst.msk [vmem:[#allocation2 + $0x20] sm:$0x3] %vm40_vm1, %v90_v17 }
 0x5bc   :  { %93 = vst.msk [vmem:[#allocation2 + $0x20] sm:$0x3] %vm46_vm3, %v2871_v11 }
 0x5be   :  { %v102_v14 = vpop.permute.xlu0 %101  ;;  %v137_v18 = vld [vmem:[#allocation2 + $0x18] sm:$0xff] }
 0x5bf   :  { %104 = vst.msk [vmem:[#allocation2 + $0x28] sm:$0x3] %vm40_vm1, %v102_v14  ;;  %2226 = vmatmul.mubr.msk.f32.gmra.mrb[6].mxu0 %vm161_vm5, %v137_v18 }
 0x5c0   :  { %105 = vst.msk [vmem:[#allocation2 + $0x28] sm:$0x3] %vm46_vm3, %v2871_v11  ;;  %281 = vmatprep.mubr.f32.mxu0 %v2786_v7 }
 0x5c2   :  { %v114_v19 = vpop.permute.xlu0 %113 }
 0x5c3   :  { %116 = vst.msk [vmem:[#allocation2 + $0x30] sm:$0x3] %vm40_vm1, %v114_v19  ;;  %v138_v22 = vld [vmem:[#allocation2 + $0x20] sm:$0xff] }
 0x5c4   :  { %117 = vst.msk [vmem:[#allocation2 + $0x30] sm:$0x3] %vm46_vm3, %v2871_v11  ;;  %2227 = vmatmul.mubr.msk.f32.gmra.mrb[8].mxu0 %vm161_vm5, %v138_v22 }
 0x5c5   :  { %287 = vmatprep.mubr.f32.mxu0 %v2786_v7 }
 0x5c7   :  { %v139_v23 = vld [vmem:[#allocation2 + $0x28] sm:$0xff] }
 0x5c8   :  { %2228 = vmatmul.mubr.msk.f32.gmra.mrb[10].mxu0 %vm161_vm5, %v139_v23 }
 0x5c9   :  { %293 = vmatprep.mubr.f32.mxu0 %v2786_v7 }
 0x5cb   :  { %v140_v24 = vld [vmem:[#allocation2 + $0x30] sm:$0xff] }
 0x5cc   :  { %2229 = vmatmul.mubr.msk.f32.gmra.mrb[12].mxu0 %vm161_vm5, %v140_v24 }
 0x5cd   :  { %299 = vmatprep.mubr.f32.mxu0 %v2786_v7 }
 0x5d0   :  { %2230 = vmatmul.mubr.msk.f32.gmra.mrb[14].mxu0 %vm161_vm5, %v141_v25 }
 0x5d1   :  { %626 = vmatprep.mubr.f32.mxu0 %v2786_v7 }
 0x629   :  { %v554_v11 = vpop.permute.xlu0 %553 }
 0x62a   :  { %556 = vst.msk [vmem:[#allocation4 + $0x10] sm:$0x3] %vm358_vm7, %v554_v11  ;;  %2233 = vmatmul.mubr.msk.f32.vlgmr.msra.gmra.mrb[16].mxu0 %vm20_vm6, %v554_v11 }
 0x62b   :  { %557 = vst.msk [vmem:[#allocation4 + $0x28] sm:$0x3] %vm360_vm8, %v554_v11  ;;  %2543 = vmatpush1.bf16.msra.mxu0 %v2940_v42  ;;  %822 = vmatprep.mubr.f32.mxu0 %v2786_v7 }
 0x62c   :  { %2545 = vmatprep.subr.bf16.mxu0 %v2942_v43 }
 0x62f   :  { %2547 = vmatpush1.bf16.msra.mxu0 %v2965_v49 }
 0x630   :  { %2549 = vmatprep.subr.bf16.mxu0 %v2976_v53 }
 0x633   :  { %2551 = vmatpush1.bf16.msra.mxu0 %v2986_v56 }
 0x634   :  { %2553 = vmatprep.subr.bf16.mxu0 %v2989_v57 }
 0x637   :  { %2555 = vmatpush1.bf16.msra.mxu0 %v3000_v60 }
 0x638   :  { %2573 = vmatprep.subr.bf16.mxu0 %v2929_v38 }
 0x692   :  { %v277_v26 = vpop.f32.mrb[6].mxu0 }
 0x693   :  { %v278_v27 = vadd.f32 %v277_v26, %v2907_v20  ;;  %v279_v28 = vpop.f32.mrb[7].mxu0 }
 0x694   :  { %v280_v29 = vadd.f32 %v279_v28, %v2909_v21 }
 0x695   :  { %312 = vst [vmem:[#allocation3 + $0x30] sm:$0xff] %v278_v27 }
 0x696   :  { %313 = vst.msk [vmem:[#allocation3 + $0x38] sm:$0xff] %vm20_vm6, %v280_v29 }
 0x697   :  { %v283_v31 = vpop.f32.mrb[8].mxu0 }
 0x698   :  { %v284_v32 = vadd.f32 %v283_v31, %v2907_v20  ;;  %v285_v33 = vpop.f32.mrb[9].mxu0 }
 0x699   :  { %v286_v34 = vadd.f32 %v285_v33, %v2909_v21 }
 0x69a   :  { %314 = vst [vmem:[#allocation3 + $0x40] sm:$0xff] %v284_v32 }
 0x69b   :  { %315 = vst.msk [vmem:[#allocation3 + $0x48] sm:$0xff] %vm20_vm6, %v286_v34  ;;  %v289_v35 = vpop.f32.mrb[10].mxu0 }
 0x69c   :  { %v290_v38 = vadd.f32 %v289_v35, %v2907_v20  ;;  %v291_v36 = vpop.f32.mrb[11].mxu0  ;;  %v558_v48 = vld [vmem:[#allocation3 + $0x30] sm:$0x3] }
 0x69d   :  { %v292_v37 = vadd.f32 %v291_v36, %v2909_v21  ;;  %v559_v62 = vld [vmem:[#allocation3 + $0x38] sm:$0x3] }
 0x69e   :  { %316 = vst [vmem:[#allocation3 + $0x50] sm:$0xff] %v290_v38 }
 0x69f   :  { %317 = vst.msk [vmem:[#allocation3 + $0x58] sm:$0xff] %vm20_vm6, %v292_v37  ;;  %v295_v39 = vpop.f32.mrb[12].mxu0 }
 0x6a0   :  { %v296_v40 = vadd.f32 %v295_v39, %v2907_v20  ;;  %v297_v41 = vpop.f32.mrb[13].mxu0 }
 0x6a1   :  { %v298_v44 = vadd.f32 %v297_v41, %v2909_v21  ;;  %v656_v8 = vld [vmem:[#allocation3 + $0x40] sm:$0x3] }
 0x6a2   :  { %318 = vst [vmem:[#allocation3 + $0x60] sm:$0xff] %v296_v40  ;;  %v657_v19 = vld [vmem:[#allocation3 + $0x48] sm:$0x3] }
 0x6a3   :  { %319 = vst.msk [vmem:[#allocation3 + $0x68] sm:$0xff] %vm20_vm6, %v298_v44  ;;  %v301_v1 = vpop.f32.mrb[14].mxu0 }
 0x6a4   :  { %v302_v45 = vadd.f32 %v301_v1, %v2907_v20  ;;  %v303_v46 = vpop.f32.mrb[15].mxu0 }
 0x6a5   :  { %v304_v47 = vadd.f32 %v303_v46, %v2909_v21  ;;  %v754_v29 = vld [vmem:[#allocation3 + $0x50] sm:$0x3] }
 0x6a6   :  { %320 = vst [vmem:[#allocation3 + $0x70] sm:$0xff] %v302_v45  ;;  %v755_v36 = vld [vmem:[#allocation3 + $0x58] sm:$0x3] }
 0x6a7   :  { %321 = vst.msk [vmem:[#allocation3 + $0x78] sm:$0xff] %vm20_vm6, %v304_v47 }
 0x6a9   :  { %v852_v44 = vld [vmem:[#allocation3 + $0x60] sm:$0x3] }
 0x6fd   :  { %v628_v50 = vpop.f32.mrb[16].mxu0 }
 0x6fe   :  { %v633_v51 = vadd.f32 %v628_v50, %v558_v48  ;;  %v630_v52 = vpop.f32.mrb[17].mxu0 }
 0x6ff   :  { %v638_v0 = vadd.f32 %v630_v52, %v2917_v30 }
 0x700   :  { %v634_v54 = vmul.f32 0.5, %v633_v51 }
 0x702   :  { %2703 = vtanh.f32 %v634_v54 }
 0x70c   :  { %v2704_v55 = vpop.eup %2703 }
 0x70d   :  { %v636_v58 = vmul.f32 0.5, %v2704_v55  ;;  %v853_v55 = vld [vmem:[#allocation3 + $0x68] sm:$0x3] }
 0x70f   :  { %v637_v59 = vadd.f32 0.5, %v636_v58 }
 0x711   :  { %v639_v61 = vmul.f32 %v638_v0, %v637_v59  ;;  %v642_v21 = vsub.f32 1.0, %v637_v59  ;;  %v648_v3 = vmul.f32 %v637_v59, %v3099_v15 }
 0x713   :  { %v640_v20 = vadd.f32 %v639_v61, %v559_v62 }
 0x715   :  { %2705 = vtanh.f32 %v640_v20 }
 0x71f   :  { %v2706_v63 = vpop.eup %2705 }
 0x720   :  { %644 = vrot.lane.b32.xlu1 %v2706_v63, %s2789_s18 }
 0x792   :  { %v645_v2 = vpop.permute.xlu1 %644 }
 0x793   :  { %v647_v4 = vmul.f32 %v645_v2, %v642_v21  ;;  %v950_v2 = vld [vmem:[#allocation3 + $0x70] sm:$0x3] }
 0x795   :  { %v649_v5 = vadd.f32 %v648_v3, %v647_v4 }
 0x797   :  { %651 = vrot.lane.b32.xlu0 %v649_v5, %s2789_s18 }
 0x809   :  { %v652_v6 = vpop.permute.xlu0 %651 }
 0x80a   :  { %654 = vst.msk [vmem:[#allocation4 + $0x18] sm:$0x3] %vm358_vm7, %v652_v6  ;;  %2234 = vmatmul.mubr.msk.f32.vlgmr.msra.gmra.mrb[4].mxu1 %vm20_vm6, %v652_v6 }
 0x80b   :  { %655 = vst.msk [vmem:[#allocation4 + $0x20] sm:$0x3] %vm360_vm8, %v652_v6  ;;  %2559 = vmatpush1.bf16.msra.mxu1 %v2940_v42  ;;  %920 = vmatprep.mubr.f32.mxu1 %v2786_v7 }
 0x80c   :  { %2561 = vmatprep.subr.bf16.mxu1 %v2942_v43 }
 0x80f   :  { %2563 = vmatpush1.bf16.msra.mxu1 %v2965_v49 }
 0x810   :  { %2565 = vmatprep.subr.bf16.mxu1 %v2976_v53 }
 0x813   :  { %2567 = vmatpush1.bf16.msra.mxu1 %v2986_v56 }
 0x814   :  { %2569 = vmatprep.subr.bf16.mxu1 %v2989_v57 }
 0x817   :  { %2571 = vmatpush1.bf16.msra.mxu1 %v3000_v60 }
 0x8dd   :  { %v726_v9 = vpop.f32.mrb[4].mxu1 }
 0x8de   :  { %v731_v10 = vadd.f32 %v726_v9, %v656_v8  ;;  %v728_v12 = vpop.f32.mrb[5].mxu1 }
 0x8df   :  { %v736_v14 = vadd.f32 %v728_v12, %v2917_v30 }
 0x8e0   :  { %v732_v13 = vmul.f32 0.5, %v731_v10 }
 0x8e2   :  { %2707 = vtanh.f32 %v732_v13 }
 0x8ec   :  { %v2708_v15 = vpop.eup %2707 }
 0x8ed   :  { %v734_v16 = vmul.f32 0.5, %v2708_v15  ;;  %v951_v15 = vld [vmem:[#allocation3 + $0x78] sm:$0x3] }
 0x8ef   :  { %v735_v17 = vadd.f32 0.5, %v734_v16 }
 0x8f1   :  { %v737_v18 = vmul.f32 %v736_v14, %v735_v17  ;;  %v740_v24 = vsub.f32 1.0, %v735_v17  ;;  %v746_v11 = vmul.f32 %v735_v17, %v649_v5  ;;  %v1056_v17 = vld [vmem:[%s3455_s1 + $0xd0] sm:$0xff]  ;;  %v1057_v14 = vld [vmem:[%s3455_s1 + $0xe0] sm:$0xff] }
 0x8f3   :  { %v738_v22 = vadd.f32 %v737_v18, %v657_v19  ;;  %v1156_v18 = vld [vmem:[%s3455_s1 + $0x170] sm:$0xff]  ;;  %v2802_v19 = vmov 0.0|0.0  }
 0x8f4   :  { %2588 = vmatprep.subr.bf16.mxu1 %v2802_v19 }
 0x8f5   :  { %2709 = vtanh.f32 %v738_v22  ;;  %v1157_v22 = vld [vmem:[%s3455_s1 + $0x180] sm:$0xff] }
 0x8ff   :  { %v2710_v23 = vpop.eup %2709 }
 0x900   :  { %742 = vrot.lane.b32.xlu1 %v2710_v23, %s2789_s18  ;;  %v1058_v23 = vld [vmem:[%s3455_s1 + $0xf0] sm:$0xff] }
 0x972   :  { %v743_v25 = vpop.permute.xlu1 %742 }
 0x973   :  { %v745_v26 = vmul.f32 %v743_v25, %v740_v24  ;;  %v1059_v24 = vld [vmem:[%s3455_s1 + $0x100] sm:$0xff]  ;;  %v2600_v25 = vpack.c.bf16 %v1157_v22, %v1156_v18 }
 0x975   :  { %v747_v27 = vadd.f32 %v746_v11, %v745_v26  ;;  %v1158_v11 = vld [vmem:[%s3455_s1 + $0x190] sm:$0xff]  ;;  %v1159_v26 = vld [vmem:[%s3455_s1 + $0x1a0] sm:$0xff] }
 0x977   :  { %749 = vrot.lane.b32.xlu0 %v747_v27, %s2789_s18 }
 0x9e9   :  { %v750_v28 = vpop.permute.xlu0 %749 }
 0x9ea   :  { %752 = vst.msk [vmem:[#allocation4 + $0x20] sm:$0x3] %vm358_vm7, %v750_v28  ;;  %2235 = vmatmul.mubr.msk.f32.vlgmr.msra.gmra.mrb[18].mxu0 %vm20_vm6, %v750_v28 }
 0x9eb   :  { %753 = vst.msk [vmem:[#allocation4 + $0x18] sm:$0x3] %vm360_vm8, %v750_v28  ;;  %2575 = vmatpush1.bf16.msra.mxu0 %v2940_v42  ;;  %1018 = vmatprep.mubr.f32.mxu0 %v2786_v7  ;;  %v2604_v28 = vpack.c.bf16 %v1159_v26, %v1158_v11  ;;  %v1303_v26 = vld [vmem:[%s3455_s1 + $0x240] sm:$0xff] }
 0x9ec   :  { %2577 = vmatprep.subr.bf16.mxu0 %v2942_v43 }
 0x9ef   :  { %2579 = vmatpush1.bf16.msra.mxu0 %v2965_v49 }
 0x9f0   :  { %2581 = vmatprep.subr.bf16.mxu0 %v2976_v53 }
 0x9f3   :  { %2583 = vmatpush1.bf16.msra.mxu0 %v2986_v56 }
 0x9f4   :  { %2585 = vmatprep.subr.bf16.mxu0 %v2989_v57 }
 0x9f7   :  { %2587 = vmatpush1.bf16.msra.mxu0 %v3000_v60 }
 0x9f8   :  { %2601 = vmatprep.subr.bf16.mxu0 %v2600_v25 }
 0xabd   :  { %v824_v31 = vpop.f32.mrb[18].mxu0 }
 0xabe   :  { %v829_v32 = vadd.f32 %v824_v31, %v754_v29  ;;  %v826_v33 = vpop.f32.mrb[19].mxu0  ;;  %v1060_v31 = vld [vmem:[%s3455_s1 + $0x110] sm:$0xff] }
 0xabf   :  { %v834_v43 = vadd.f32 %v826_v33, %v2917_v30  ;;  %v1160_v33 = vld [vmem:[%s3455_s1 + $0x1b0] sm:$0xff] }
 0xac0   :  { %v830_v34 = vmul.f32 0.5, %v829_v32  ;;  %v1061_v32 = vld [vmem:[%s3455_s1 + $0x120] sm:$0xff] }
 0xac2   :  { %2711 = vtanh.f32 %v830_v34  ;;  %v2595_v34 = vpack.c.bf16 %v1061_v32, %v1060_v31 }
 0xacc   :  { %v2712_v42 = vpop.eup %2711 }
 0xacd   :  { %v832_v35 = vmul.f32 0.5, %v2712_v42  ;;  %v1161_v42 = vld [vmem:[%s3455_s1 + $0x1c0] sm:$0xff] }
 0xacf   :  { %v833_v38 = vadd.f32 0.5, %v832_v35  ;;  %v2608_v35 = vpack.c.bf16 %v1161_v42, %v1160_v33 }
 0xad1   :  { %v835_v49 = vmul.f32 %v834_v43, %v833_v38  ;;  %v838_v57 = vsub.f32 1.0, %v833_v38  ;;  %v844_v37 = vmul.f32 %v833_v38, %v747_v27  ;;  %v2592_v27 = vpack.c.bf16 %v1059_v24, %v1058_v23  ;;  %v1062_v38 = vld [vmem:[%s3455_s1 + $0x130] sm:$0xff]  ;;  %v1063_v43 = vld [vmem:[%s3455_s1 + $0x140] sm:$0xff] }
 0xad2   :  { %v1300_v23 = vld [vmem:[%s3455_s1 + $0x210] sm:$0xff]  ;;  %v1301_v24 = vld [vmem:[%s3455_s1 + $0x220] sm:$0xff] }
 0xad3   :  { %v836_v53 = vadd.f32 %v835_v49, %v755_v36  ;;  %v1162_v49 = vld [vmem:[%s3455_s1 + $0x1d0] sm:$0xff]  ;;  %v2598_v36 = vpack.c.bf16 %v1063_v43, %v1062_v38  ;;  %v3295_v11 = vpack.c.bf16 %v1301_v24, %v1300_v23 }
 0xad5   :  { %2713 = vtanh.f32 %v836_v53  ;;  %v1163_v53 = vld [vmem:[%s3455_s1 + $0x1e0] sm:$0xff] }
 0xadf   :  { %v2714_v56 = vpop.eup %2713 }
 0xae0   :  { %840 = vrot.lane.b32.xlu1 %v2714_v56, %s2789_s18  ;;  %v2612_v56 = vpack.c.bf16 %v1163_v53, %v1162_v49 }
 0xb52   :  { %v841_v60 = vpop.permute.xlu1 %840 }
 0xb53   :  { %v843_v39 = vmul.f32 %v841_v60, %v838_v57 }
 0xb55   :  { %v845_v40 = vadd.f32 %v844_v37, %v843_v39 }
 0xb57   :  { %847 = vrot.lane.b32.xlu0 %v845_v40, %s2789_s18 }
 0xbc9   :  { %v848_v41 = vpop.permute.xlu0 %847 }
 0xbca   :  { %850 = vst.msk [vmem:[#allocation4 + $0x28] sm:$0x3] %vm358_vm7, %v848_v41  ;;  %2236 = vmatmul.mubr.msk.f32.vlgmr.msra.gmra.mrb[6].mxu1 %vm20_vm6, %v848_v41 }
 0xbcb   :  { %851 = vst.msk [vmem:[#allocation4 + $0x10] sm:$0x3] %vm360_vm8, %v848_v41  ;;  %2342 = vmatprep.mubr.msk.f32.mxu1 %vm2803_vm9, %v2786_v7 }
 0xc9d   :  { %v922_v1 = vpop.f32.mrb[6].mxu1 }
 0xc9e   :  { %v927_v45 = vadd.f32 %v922_v1, %v852_v44  ;;  %v924_v46 = vpop.f32.mrb[7].mxu1 }
 0xc9f   :  { %v932_v52 = vadd.f32 %v924_v46, %v2917_v30  ;;  %v1051_v46 = vld [vmem:[#allocation4 + $0x18] sm:$0xff] }
 0xca0   :  { %v928_v47 = vmul.f32 0.5, %v927_v45  ;;  %v1050_v45 = vld [vmem:[#allocation4 + $0x10] sm:$0xff] }
 0xca2   :  { %2715 = vtanh.f32 %v928_v47  ;;  %v1052_v47 = vld [vmem:[#allocation4 + $0x20] sm:$0xff] }
 0xcac   :  { %v2716_v48 = vpop.eup %2715 }
 0xcad   :  { %v930_v50 = vmul.f32 0.5, %v2716_v48  ;;  %v1053_v48 = vld [vmem:[#allocation4 + $0x28] sm:$0xff] }
 0xcaf   :  { %v931_v51 = vadd.f32 0.5, %v930_v50 }
 0xcb1   :  { %v933_v54 = vmul.f32 %v932_v52, %v931_v51  ;;  %v936_v0 = vsub.f32 1.0, %v931_v51  ;;  %v942_v62 = vmul.f32 %v931_v51, %v845_v40  ;;  %v1164_v52 = vld [vmem:[%s3455_s1 + $0x1f0] ss:$0 sm:$0xff] }
 0xcb3   :  { %v934_v58 = vadd.f32 %v933_v54, %v853_v55 }
 0xcb5   :  { %2717 = vtanh.f32 %v934_v58 }
 0xcbf   :  { %v2718_v59 = vpop.eup %2717 }
 0xcc0   :  { %938 = vrot.lane.b32.xlu1 %v2718_v59, %s2789_s18 }
 0xd32   :  { %v939_v61 = vpop.permute.xlu1 %938 }
 0xd33   :  { %v941_v20 = vmul.f32 %v939_v61, %v936_v0 }
 0xd35   :  { %v3187_v63 = vadd.f32 %v942_v62, %v941_v20 }
 0xd37   :  { %945 = vrot.lane.b32.xlu0 %v3187_v63, %s2789_s18 }
 0xda9   :  { %v946_v21 = vpop.permute.xlu0 %945 }
 0xdaa   :  { %948 = vst.msk [vmem:[#allocation4 + $0x30] sm:$0x3] %vm358_vm7, %v946_v21  ;;  %2237 = vmatmul.mubr.msk.f32.vlgmr.msra.gmra.mrb[20].mxu0 %vm20_vm6, %v946_v21 }
 0xdab   :  { %949 = vst.msk [vmem:[#allocation4 + $0x8] sm:$0x3] %vm360_vm8, %v946_v21  ;;  %2603 = vmatpush3.bf16.msra.mxu0 %v2600_v25  ;;  %v1302_v25 = vld [vmem:[%s3455_s1 + $0x230] sm:$0xff] }
 0xdac   :  { %2605 = vmatprep.subr.bf16.mxu0 %v2604_v28 }
 0xdaf   :  { %2607 = vmatpush3.bf16.msra.mxu0 %v2604_v28 }
 0xdb0   :  { %2609 = vmatprep.subr.bf16.mxu0 %v2608_v35 }
 0xdb1   :  { %v1054_v50 = vld [vmem:[#allocation4 + $0x30] sm:$0xff] }
 0xdb2   :  { %v1049_v1 = vld [vmem:[#allocation4 + $0x8] sm:$0xff] }
 0xdb3   :  { %2611 = vmatpush3.bf16.msra.mxu0 %v2608_v35 }
 0xdb4   :  { %2613 = vmatprep.subr.bf16.mxu0 %v2612_v56 }
 0xdb7   :  { %2615 = vmatpush3.bf16.msra.mxu0 %v2612_v56 }
 0xdb8   :  { %2628 = vmatprep.subr.bf16.mxu0 %v2802_v19 }
 0xe7d   :  { %v1020_v3 = vpop.f32.mrb[20].mxu0 }
 0xe7e   :  { %v1025_v4 = vadd.f32 %v1020_v3, %v950_v2  ;;  %v1022_v5 = vpop.f32.mrb[21].mxu0 }
 0xe7f   :  { %v1030_v12 = vadd.f32 %v1022_v5, %v2917_v30  ;;  %v2589_v30 = vpack.c.bf16 %v1057_v14, %v1056_v17  ;;  %v1304_v17 = vld [vmem:[%s3455_s1 + $0x200] ss:$0 sm:$0xff] }
 0xe80   :  { %v1026_v6 = vmul.f32 0.5, %v1025_v4 }
 0xe81   :  { %2590 = vmatpush3.bf16.msra.mxu1 %v2589_v30 }
 0xe82   :  { %2719 = vtanh.f32 %v1026_v6  ;;  %2591 = vmatprep.subr.bf16.mxu1 %v2802_v19 }
 0xe85   :  { %2593 = vmatpush3.bf16.msra.mxu1 %v2592_v27  ;;  %v3301_v27 = vpack.c.bf16 %v1303_v26, %v1302_v25 }
 0xe86   :  { %2594 = vmatprep.subr.bf16.mxu1 %v2802_v19 }
 0xe89   :  { %2596 = vmatpush3.bf16.msra.mxu1 %v2595_v34 }
 0xe8a   :  { %2597 = vmatprep.subr.bf16.mxu1 %v2802_v19 }
 0xe8c   :  { %v2720_v8 = vpop.eup %2719 }
 0xe8d   :  { %v1028_v9 = vmul.f32 0.5, %v2720_v8  ;;  %2599 = vmatpush3.bf16.msra.mxu1 %v2598_v36 }
 0xe8e   :  { %2616 = vmatprep.subr.bf16.mxu1 %v2802_v19 }
 0xe8f   :  { %v1029_v10 = vadd.f32 0.5, %v1028_v9 }
 0xe91   :  { %v1031_v13 = vmul.f32 %v1030_v12, %v1029_v10  ;;  %v1034_v57 = vsub.f32 1.0, %v1029_v10  ;;  %v1040_v37 = vmul.f32 %v1029_v10, %v3187_v63 }
 0xe93   :  { %v1032_v16 = vadd.f32 %v1031_v13, %v951_v15 }
 0xe95   :  { %2721 = vtanh.f32 %v1032_v16 }
 0xe9f   :  { %v2722_v29 = vpop.eup %2721 }
 0xea0   :  { %1036 = vrot.lane.b32.xlu1 %v2722_v29, %s2789_s18 }
 0xf12   :  { %v1037_v60 = vpop.permute.xlu1 %1036 }
 0xf13   :  { %v1039_v39 = vmul.f32 %v1037_v60, %v1034_v57 }
 0xf15   :  { %v1041_v40 = vadd.f32 %v1040_v37, %v1039_v39 }
 0xf17   :  { %1043 = vrot.lane.b32.xlu0 %v1041_v40, %s2789_s18 }
 0xf89   :  { %v1044_v41 = vpop.permute.xlu0 %1043 }
 0xf8a   :  { %1046 = vst.msk [vmem:[#allocation4 + $0x38] sm:$0x3] %vm358_vm7, %v1044_v41 }
 0xf8b   :  { %1047 = vst.msk [vmem:[#allocation4] sm:$0x3] %vm360_vm8, %v1044_v41 }
 0xf91   :  { %v1055_v51 = vld [vmem:[#allocation4 + $0x38] sm:$0xff] }
 0xf92   :  { %v1048_v44 = vld [vmem:[#allocation4] sm:$0xff] }
 0xf93   :  { %2343 = vmatmul.mubr.msk.f32.vlgmr.msra.gmra.mrb[8].mxu1 %vm20_vm6, %v1048_v44  ;;  %2361 = vmatprep.mubr.msk.f32.mxu0 %vm20_vm6, %v1048_v44 }
 0xf94   :  { %2362 = vmatmul.mubr.msk.f32.vlgmr.msra.gmra.mrb[22].mxu0 %vm20_vm6, %v1049_v1  ;;  %2381 = vmatprep.mubr.msk.f32.mxu1 %vm2803_vm9, %v2786_v7 }
 0xf95   :  { %2364 = vmatprep.mubr.msk.f32.mxu0 %vm20_vm6, %v1050_v45  ;;  %2618 = vmatpush3.bf16.msra.mxu1 %v3295_v11 }
 0xf96   :  { %2630 = vmatpush3.bf16.msra.mxu0 %v3295_v11  ;;  %2619 = vmatprep.subr.bf16.mxu1 %v2802_v19 }
 0xf97   :  { %2631 = vmatprep.subr.bf16.mxu0 %v2802_v19 }
 0xf98   :  { %2365 = vmatmul.mubr.msk.f32.gmra.mrb[24].mxu0 %vm20_vm6, %v1051_v46 }
 0xf99   :  { %2367 = vmatprep.mubr.msk.f32.mxu0 %vm20_vm6, %v1052_v47  ;;  %2621 = vmatpush3.bf16.msra.mxu1 %v3301_v27 }
 0xf9a   :  { %2633 = vmatpush3.bf16.msra.mxu0 %v3301_v27  ;;  %2622 = vmatprep.subr.bf16.mxu1 %v2802_v19 }
 0xf9b   :  { %2640 = vmatprep.subr.bf16.mxu0 %v2802_v19 }
 0xf9c   :  { %2368 = vmatmul.mubr.msk.f32.gmra.mrb[26].mxu0 %vm20_vm6, %v1053_v48 }
 0xf9d   :  { %2370 = vmatprep.mubr.msk.f32.mxu0 %vm20_vm6, %v1054_v50 }
 0xfa0   :  { %2371 = vmatmul.mubr.msk.f32.gmra.mrb[28].mxu0 %vm20_vm6, %v1055_v51 }
 0xfa1   :  { %2403 = vmatprep.mubr.msk.f32.mxu0 %vm2803_vm9, %v2786_v7 }
0x1066   :  { %v3272_v54 = vpop.f32.mrb[8].mxu1 }
0x1067   :  { %v2344_v55 = vpop.f32.mrb[9].mxu1  ;;  %v2363_v58 = vpop.f32.mrb[22].mxu0 }
0x1068   :  { %v1258_v59 = vadd.f32 %v2363_v58, %v1164_v52  ;;  %v1252_v0 = vpop.f32.mrb[23].mxu0 }
0x1069   :  { %v1253_v61 = vadd.f32 %v1252_v0, %v1164_v52 }
0x106a   :  { %1293 = vst.msk [vmem:[#allocation3 + $0x10] sm:$0xff] %vm1291_vm10, %v1258_v59 }
0x106b   :  { %1292 = vst.msk [vmem:[#allocation3] sm:$0xff] %vm1291_vm10, %v1253_v61  ;;  %v2366_v62 = vpop.f32.mrb[24].mxu0 }
0x106c   :  { %v1268_v20 = vadd.f32 %v2366_v62, %v1164_v52  ;;  %v1262_v63 = vpop.f32.mrb[25].mxu0 }
0x106d   :  { %v1263_v21 = vadd.f32 %v1262_v63, %v1164_v52 }
0x106e   :  { %1295 = vst.msk [vmem:[#allocation3 + $0x30] sm:$0xff] %vm1291_vm10, %v1268_v20 }
0x106f   :  { %1294 = vst.msk [vmem:[#allocation3 + $0x20] sm:$0xff] %vm1291_vm10, %v1263_v21  ;;  %v2369_v2 = vpop.f32.mrb[26].mxu0 }
0x1070   :  { %v1278_v3 = vadd.f32 %v2369_v2, %v1164_v52  ;;  %v1272_v4 = vpop.f32.mrb[27].mxu0 }
0x1071   :  { %v1273_v5 = vadd.f32 %v1272_v4, %v1164_v52 }
0x1072   :  { %1297 = vst.msk [vmem:[#allocation3 + $0x50] sm:$0xff] %vm1291_vm10, %v1278_v3 }
0x1073   :  { %1296 = vst.msk [vmem:[#allocation3 + $0x40] sm:$0xff] %vm1291_vm10, %v1273_v5  ;;  %v2372_v6 = vpop.f32.mrb[28].mxu0 }
0x1074   :  { %v1288_v8 = vadd.f32 %v2372_v6, %v1164_v52  ;;  %v1282_v9 = vpop.f32.mrb[29].mxu0 }
0x1075   :  { %v1283_v10 = vadd.f32 %v1282_v9, %v1164_v52 }
0x1076   :  { %1299 = vst.msk [vmem:[#allocation3 + $0x70] sm:$0xff] %vm1291_vm10, %v1288_v8 }
0x1077   :  { %1298 = vst.msk [vmem:[#allocation3 + $0x60] sm:$0xff] %vm1291_vm10, %v1283_v10 }
0x1079   :  { %v1429_v55 = vld [vmem:[#allocation3 + $0x50] sm:$0x3] }
0x107d   :  { %v1305_v12 = vld [vmem:[#allocation3 + $0x70] sm:$0x3] }
0x107e   :  { %v1306_v13 = vmul.f32 0.5, %v1305_v12  ;;  %v1323_v43 = vld [vmem:[#allocation3 + $0x60] sm:$0x3] }
0x1080   :  { %2723 = vtanh.f32 %v1306_v13 }
0x108a   :  { %v2724_v15 = vpop.eup %2723 }
0x108b   :  { %v1308_v16 = vmul.f32 0.5, %v2724_v15 }
0x108d   :  { %v1309_v14 = vadd.f32 0.5, %v1308_v16  ;;  %v1530_v16 = vld [vmem:[#allocation3 + $0x40] sm:$0x3] }
0x108f   :  { %v1310_v18 = vmul.f32 %v1309_v14, %v1304_v17  ;;  %v1317_v29 = vsub.f32 1.0, %v1309_v14 }
0x1091   :  { %1312 = vrot.lane.b32.xlu1 %v1310_v18, %s2789_s18 }
0x1103   :  { %v1313_v30 = vpop.permute.xlu1 %1312 }
0x1104   :  { %v1315_v22 = vadd.f32 %v1313_v30, %v1305_v12 }
0x1106   :  { %2725 = vtanh.f32 %v1315_v22 }
0x1110   :  { %v2726_v28 = vpop.eup %2725 }
0x1111   :  { %1319 = vrot.lane.b32.xlu0 %v2726_v28, %s2804_s22 }
0x1115   :  { %1406 = vrot.lane.b32.xlu0 %v1304_v17, %s2789_s18 }
0x1183   :  { %v1320_v31 = vpop.permute.xlu0 %1319 }
0x1184   :  { %v1322_v32 = vmul.f32 %v1320_v31, %v1317_v29 }
0x1186   :  { %1325 = vrot.lane.b32.xlu1 %v1322_v32, %s2804_s22 }
0x1187   :  { %v3320_v34 = vpop.permute.xlu0 %1406 }
0x11f8   :  { %v1326_v33 = vpop.permute.xlu1 %1325 }
0x11f9   :  { %2382 = vmatmul.mubr.msk.f32.vlgmr.msra.gmra.mrb[10].mxu1 %vm1327_vm11, %v1326_v33 }
0x11fa   :  { %2624 = vmatpush3.bf16.msra.mxu1 %v3295_v11  ;;  %2392 = vmatprep.mubr.msk.f32.mxu1 %vm2803_vm9, %v2786_v7 }
0x11fb   :  { %2625 = vmatprep.subr.bf16.mxu1 %v2802_v19 }
0x11fe   :  { %2627 = vmatpush3.bf16.msra.mxu1 %v3301_v27 }
0x11ff   :  { %2634 = vmatprep.subr.bf16.mxu1 %v2802_v19 }
0x12cc   :  { %v1396_v42 = vpop.f32.mrb[10].mxu1 }
0x12cd   :  { %v2383_v35 = vpop.f32.mrb[11].mxu1  ;;  %v1409_v38 = vadd.f32 %v3320_v34, %v1396_v42  ;;  %v1400_v49 = vadd.f32 %v1396_v42, %v1323_v43 }
0x12cf   :  { %1411 = vrot.lane.b32.xlu1 %v1409_v38, %s2789_s18  ;;  %v1401_v36 = vmul.f32 0.5, %v1400_v49 }
0x12d1   :  { %2727 = vtanh.f32 %v1401_v36  ;;  %v1631_v36 = vld [vmem:[#allocation3 + $0x30] sm:$0x3] }
0x12db   :  { %v2728_v53 = vpop.eup %2727 }
0x12dc   :  { %v1403_v56 = vmul.f32 0.5, %v2728_v53 }
0x12de   :  { %v1404_v57 = vadd.f32 0.5, %v1403_v56 }
0x12e0   :  { %v1421_v44 = vsub.f32 1.0, %v1404_v57  ;;  %v1427_v45 = vmul.f32 %v1404_v57, %v1322_v32 }
0x1341   :  { %v1412_v60 = vpop.permute.xlu1 %1411 }
0x1342   :  { %v1414_v37 = vmul.f32 %v1412_v60, %v1404_v57 }
0x1344   :  { %1416 = vrot.lane.b32.xlu0 %v1414_v37, %s2789_s18 }
0x13b6   :  { %v1417_v39 = vpop.permute.xlu0 %1416 }
0x13b7   :  { %v1419_v40 = vadd.f32 %v1417_v39, %v1323_v43 }
0x13b9   :  { %2729 = vtanh.f32 %v1419_v40 }
0x13c3   :  { %v2730_v41 = vpop.eup %2729 }
0x13c4   :  { %1423 = vrot.lane.b32.xlu1 %v2730_v41, %s2804_s22 }
0x1436   :  { %v1424_v1 = vpop.permute.xlu1 %1423 }
0x1437   :  { %v1426_v46 = vmul.f32 %v1424_v1, %v1421_v44 }
0x1439   :  { %v1428_v47 = vadd.f32 %v1427_v45, %v1426_v46 }
0x143b   :  { %1431 = vrot.lane.b32.xlu0 %v1428_v47, %s2804_s22 }
0x14ad   :  { %v1432_v48 = vpop.permute.xlu0 %1431 }
0x14ae   :  { %2393 = vmatmul.mubr.msk.f32.vlgmr.msra.gmra.mrb[12].mxu1 %vm1327_vm11, %v1432_v48 }
0x14af   :  { %2636 = vmatpush3.bf16.msra.mxu1 %v3295_v11  ;;  %2414 = vmatprep.mubr.msk.f32.mxu1 %vm2803_vm9, %v2786_v7 }
0x14b0   :  { %2637 = vmatprep.subr.bf16.mxu1 %v2802_v19 }
0x14b3   :  { %2639 = vmatpush3.bf16.msra.mxu1 %v3301_v27 }
0x14b4   :  { %2646 = vmatprep.subr.bf16.mxu1 %v2802_v19 }
0x1581   :  { %v1501_v50 = vpop.f32.mrb[12].mxu1 }
0x1582   :  { %v1510_v51 = vadd.f32 %v1501_v50, %v3320_v34  ;;  %v2394_v52 = vpop.f32.mrb[13].mxu1  ;;  %v1505_v58 = vadd.f32 %v1501_v50, %v1429_v55 }
0x1584   :  { %1512 = vrot.lane.b32.xlu1 %v1510_v51, %s2789_s18  ;;  %v1506_v59 = vmul.f32 0.5, %v1505_v58 }
0x1586   :  { %2731 = vtanh.f32 %v1506_v59  ;;  %v1732_v59 = vld [vmem:[#allocation3 + $0x20] sm:$0x3] }
0x1590   :  { %v2732_v0 = vpop.eup %2731 }
0x1591   :  { %v1508_v61 = vmul.f32 0.5, %v2732_v0 }
0x1593   :  { %v1509_v62 = vadd.f32 0.5, %v1508_v61 }
0x1595   :  { %v1522_v4 = vsub.f32 1.0, %v1509_v62  ;;  %v1528_v6 = vmul.f32 %v1509_v62, %v1428_v47 }
0x15f6   :  { %v1513_v20 = vpop.permute.xlu1 %1512 }
0x15f7   :  { %v1515_v63 = vmul.f32 %v1513_v20, %v1509_v62 }
0x15f9   :  { %1517 = vrot.lane.b32.xlu0 %v1515_v63, %s2789_s18 }
0x166b   :  { %v1518_v21 = vpop.permute.xlu0 %1517 }
0x166c   :  { %v1520_v2 = vadd.f32 %v1518_v21, %v1429_v55 }
0x166e   :  { %2733 = vtanh.f32 %v1520_v2 }
0x1678   :  { %v2734_v3 = vpop.eup %2733 }
0x1679   :  { %1524 = vrot.lane.b32.xlu1 %v2734_v3, %s2804_s22 }
0x16eb   :  { %v1525_v5 = vpop.permute.xlu1 %1524 }
0x16ec   :  { %v1527_v8 = vmul.f32 %v1525_v5, %v1522_v4 }
0x16ee   :  { %v1529_v9 = vadd.f32 %v1528_v6, %v1527_v8 }
0x16f0   :  { %1532 = vrot.lane.b32.xlu0 %v1529_v9, %s2804_s22 }
0x1762   :  { %v1533_v10 = vpop.permute.xlu0 %1532 }
0x1763   :  { %2404 = vmatmul.mubr.msk.f32.vlgmr.msra.gmra.mrb[30].mxu0 %vm1327_vm11, %v1533_v10 }
0x1764   :  { %2642 = vmatpush3.bf16.msra.mxu0 %v3295_v11  ;;  %2425 = vmatprep.mubr.msk.f32.mxu0 %vm2803_vm9, %v2786_v7 }
0x1765   :  { %2643 = vmatprep.subr.bf16.mxu0 %v2802_v19 }
0x1768   :  { %2645 = vmatpush3.bf16.msra.mxu0 %v3301_v27 }
0x1769   :  { %2652 = vmatprep.subr.bf16.mxu0 %v2802_v19 }
0x1836   :  { %v1602_v12 = vpop.f32.mrb[30].mxu0 }
0x1837   :  { %v1611_v13 = vadd.f32 %v1602_v12, %v3320_v34  ;;  %v2405_v15 = vpop.f32.mrb[31].mxu0  ;;  %v1606_v17 = vadd.f32 %v1602_v12, %v1530_v16 }
0x1839   :  { %1613 = vrot.lane.b32.xlu1 %v1611_v13, %s2789_s18  ;;  %v1607_v14 = vmul.f32 0.5, %v1606_v17 }
0x183b   :  { %2735 = vtanh.f32 %v1607_v14 }
0x1845   :  { %v2736_v18 = vpop.eup %2735 }
0x1846   :  { %v1609_v30 = vmul.f32 0.5, %v2736_v18 }
0x1848   :  { %v1610_v22 = vadd.f32 0.5, %v1609_v30 }
0x184a   :  { %v1623_v29 = vsub.f32 1.0, %v1610_v22  ;;  %v1629_v32 = vmul.f32 %v1610_v22, %v1529_v9 }
0x18ab   :  { %v1614_v23 = vpop.permute.xlu1 %1613 }
0x18ac   :  { %v1616_v24 = vmul.f32 %v1614_v23, %v1610_v22 }
0x18ae   :  { %1618 = vrot.lane.b32.xlu0 %v1616_v24, %s2789_s18 }
0x1920   :  { %v1619_v25 = vpop.permute.xlu0 %1618 }
0x1921   :  { %v1621_v26 = vadd.f32 %v1619_v25, %v1530_v16  ;;  %v1833_v16 = vld [vmem:[#allocation3 + $0x10] sm:$0x3] }
0x1923   :  { %2737 = vtanh.f32 %v1621_v26 }
0x192d   :  { %v2738_v28 = vpop.eup %2737 }
0x192e   :  { %1625 = vrot.lane.b32.xlu1 %v2738_v28, %s2804_s22 }
0x19a0   :  { %v1626_v31 = vpop.permute.xlu1 %1625 }
0x19a1   :  { %v1628_v33 = vmul.f32 %v1626_v31, %v1623_v29 }
0x19a3   :  { %v1630_v42 = vadd.f32 %v1629_v32, %v1628_v33 }
0x19a5   :  { %1633 = vrot.lane.b32.xlu0 %v1630_v42, %s2804_s22 }
0x1a17   :  { %v1634_v35 = vpop.permute.xlu0 %1633 }
0x1a18   :  { %2415 = vmatmul.mubr.msk.f32.vlgmr.msra.gmra.mrb[14].mxu1 %vm1327_vm11, %v1634_v35 }
0x1a19   :  { %2648 = vmatpush3.bf16.msra.mxu1 %v3295_v11  ;;  %2436 = vmatprep.mubr.msk.f32.mxu1 %vm2803_vm9, %v2786_v7 }
0x1a1a   :  { %2649 = vmatprep.subr.bf16.mxu1 %v2802_v19 }
0x1a1d   :  { %2651 = vmatpush3.bf16.msra.mxu1 %v3301_v27 }
0x1a1e   :  { %2658 = vmatprep.subr.bf16.mxu1 %v2802_v19 }
0x1aeb   :  { %v1703_v38 = vpop.f32.mrb[14].mxu1 }
0x1aec   :  { %v1712_v43 = vadd.f32 %v1703_v38, %v3320_v34  ;;  %v2416_v49 = vpop.f32.mrb[15].mxu1  ;;  %v1707_v53 = vadd.f32 %v1703_v38, %v1631_v36  ;;  %v1064_v38 = vld [vmem:[%s3455_s1 + $0x150] ss:$0 sm:$0xff] }
0x1aee   :  { %1714 = vrot.lane.b32.xlu1 %v1712_v43, %s2789_s18  ;;  %v1708_v56 = vmul.f32 0.5, %v1707_v53  ;;  %v1135_v43 = vadd.f32 %v3272_v54, %v1064_v38 }
0x1af0   :  { %2739 = vtanh.f32 %v1708_v56  ;;  %v1138_v49 = vmul.f32 0.5, %v1135_v43 }
0x1afa   :  { %v2740_v57 = vpop.eup %2739 }
0x1afb   :  { %v1710_v60 = vmul.f32 0.5, %v2740_v57 }
0x1afd   :  { %v1711_v37 = vadd.f32 0.5, %v1710_v60 }
0x1aff   :  { %v1724_v45 = vsub.f32 1.0, %v1711_v37  ;;  %v1730_v47 = vmul.f32 %v1711_v37, %v1630_v42 }
0x1b60   :  { %v1715_v39 = vpop.permute.xlu1 %1714 }
0x1b61   :  { %v1717_v40 = vmul.f32 %v1715_v39, %v1711_v37  ;;  %v1142_v39 = vld [vmem:[%s3455_s1 + $0x160] ss:$0 sm:$0xff] }
0x1b63   :  { %1719 = vrot.lane.b32.xlu0 %v1717_v40, %s2789_s18  ;;  %v1934_v40 = vld [vmem:[#allocation3] sm:$0x3] }
0x1bd5   :  { %v1720_v41 = vpop.permute.xlu0 %1719 }
0x1bd6   :  { %v1722_v44 = vadd.f32 %v1720_v41, %v1631_v36 }
0x1bd8   :  { %2741 = vtanh.f32 %v1722_v44 }
0x1be2   :  { %v2742_v1 = vpop.eup %2741 }
0x1be3   :  { %1726 = vrot.lane.b32.xlu1 %v2742_v1, %s2804_s22 }
0x1c55   :  { %v1727_v46 = vpop.permute.xlu1 %1726 }
0x1c56   :  { %v1729_v48 = vmul.f32 %v1727_v46, %v1724_v45 }
0x1c58   :  { %v1731_v50 = vadd.f32 %v1730_v47, %v1729_v48 }
0x1c5a   :  { %1734 = vrot.lane.b32.xlu0 %v1731_v50, %s2804_s22 }
0x1ccc   :  { %v1735_v51 = vpop.permute.xlu0 %1734 }
0x1ccd   :  { %2426 = vmatmul.mubr.msk.f32.vlgmr.msra.gmra.mrb[32].mxu0 %vm1327_vm11, %v1735_v51  ;;  %v2036_v51 = vld [vmem:[%s3455_s1 + $0x260] sm:$0xff] }
0x1cce   :  { %2654 = vmatpush3.bf16.msra.mxu0 %v3295_v11  ;;  %2447 = vmatprep.mubr.msk.f32.mxu0 %vm2803_vm9, %v2786_v7 }
0x1ccf   :  { %2655 = vmatprep.subr.bf16.mxu0 %v2802_v19 }
0x1cd2   :  { %2657 = vmatpush3.bf16.msra.mxu0 %v3301_v27 }
0x1cd3   :  { %2664 = vmatprep.subr.bf16.mxu0 %v2802_v19 }
0x1da0   :  { %v1804_v52 = vpop.f32.mrb[32].mxu0 }
0x1da1   :  { %v1813_v55 = vadd.f32 %v1804_v52, %v3320_v34  ;;  %v2427_v58 = vpop.f32.mrb[33].mxu0  ;;  %v1808_v0 = vadd.f32 %v1804_v52, %v1732_v59 }
0x1da2   :  { %v2037_v58 = vld [vmem:[%s3455_s1 + $0x270] sm:$0xff] }
0x1da3   :  { %1815 = vrot.lane.b32.xlu1 %v1813_v55, %s2789_s18  ;;  %v1809_v61 = vmul.f32 0.5, %v1808_v0 }
0x1da5   :  { %2743 = vtanh.f32 %v1809_v61 }
0x1daf   :  { %v2744_v11 = vpop.eup %2743 }
0x1db0   :  { %v1811_v62 = vmul.f32 0.5, %v2744_v11 }
0x1db2   :  { %v1812_v20 = vadd.f32 0.5, %v1811_v62  ;;  %v2039_v62 = vld [vmem:[%s3455_s1 + $0x290] sm:$0xff] }
0x1db4   :  { %v1825_v4 = vsub.f32 1.0, %v1812_v20  ;;  %v1831_v6 = vmul.f32 %v1812_v20, %v1731_v50  ;;  %v2035_v50 = vld [vmem:[%s3455_s1 + $0x250] sm:$0xff] }
0x1db5   :  { %v2665_v52 = vpack.c.bf16 %v2036_v51, %v2035_v50 }
0x1e15   :  { %v1816_v63 = vpop.permute.xlu1 %1815 }
0x1e16   :  { %v1818_v21 = vmul.f32 %v1816_v63, %v1812_v20  ;;  %v2040_v20 = vld [vmem:[%s3455_s1 + $0x2a0] sm:$0xff]  ;;  %v2041_v63 = vld [vmem:[%s3455_s1 + $0x2b0] sm:$0xff] }
0x1e18   :  { %1820 = vrot.lane.b32.xlu0 %v1818_v21, %s2789_s18  ;;  %v2659_v21 = vpack.c.bf16 %v2040_v20, %v2039_v62 }
0x1e8a   :  { %v1821_v27 = vpop.permute.xlu0 %1820 }
0x1e8b   :  { %v1823_v2 = vadd.f32 %v1821_v27, %v1732_v59  ;;  %v2038_v59 = vld [vmem:[%s3455_s1 + $0x280] sm:$0xff] }
0x1e8c   :  { %v2668_v61 = vpack.c.bf16 %v2038_v59, %v2037_v58  ;;  %v2042_v27 = vld [vmem:[%s3455_s1 + $0x2c0] sm:$0xff] }
0x1e8d   :  { %2745 = vtanh.f32 %v1823_v2  ;;  %v2662_v2 = vpack.c.bf16 %v2042_v27, %v2041_v63 }
0x1e97   :  { %v2746_v3 = vpop.eup %2745 }
0x1e98   :  { %1827 = vrot.lane.b32.xlu1 %v2746_v3, %s2804_s22 }
0x1f0a   :  { %v1828_v5 = vpop.permute.xlu1 %1827 }
0x1f0b   :  { %v1830_v8 = vmul.f32 %v1828_v5, %v1825_v4 }
0x1f0d   :  { %v1832_v9 = vadd.f32 %v1831_v6, %v1830_v8 }
0x1f0f   :  { %1835 = vrot.lane.b32.xlu0 %v1832_v9, %s2804_s22 }
0x1f81   :  { %v1836_v10 = vpop.permute.xlu0 %1835 }
0x1f82   :  { %2437 = vmatmul.mubr.msk.f32.vlgmr.msra.gmra.mrb[16].mxu1 %vm1327_vm11, %v1836_v10 }
0x1f83   :  { %2458 = vmatprep.mubr.msk.f32.mxu1 %vm2803_vm9, %v2786_v7  ;;  %2660 = vmatpush3.bf16.msra.mxu1 %v2659_v21 }
0x1f84   :  { %2661 = vmatprep.subr.bf16.mxu1 %v2802_v19 }
0x1f87   :  { %2663 = vmatpush3.bf16.msra.mxu1 %v2662_v2 }
0x2055   :  { %v1905_v12 = vpop.f32.mrb[16].mxu1 }
0x2056   :  { %v1914_v13 = vadd.f32 %v1905_v12, %v3320_v34  ;;  %v2438_v15 = vpop.f32.mrb[17].mxu1  ;;  %v1909_v17 = vadd.f32 %v1905_v12, %v1833_v16 }
0x2058   :  { %1916 = vrot.lane.b32.xlu1 %v1914_v13, %s2789_s18  ;;  %v1910_v14 = vmul.f32 0.5, %v1909_v17 }
0x205a   :  { %2747 = vtanh.f32 %v1910_v14 }
0x2064   :  { %v2748_v18 = vpop.eup %2747 }
0x2065   :  { %v1912_v30 = vmul.f32 0.5, %v2748_v18  ;;  %v2193_v18 = vld [vmem:[%s3455_s1 + $0x2d0] ss:$0 sm:$0xff] }
0x2067   :  { %v1913_v22 = vadd.f32 0.5, %v1912_v30 }
0x2069   :  { %v1926_v29 = vsub.f32 1.0, %v1913_v22  ;;  %v1932_v32 = vmul.f32 %v1913_v22, %v1832_v9 }
0x20ca   :  { %v1917_v23 = vpop.permute.xlu1 %1916 }
0x20cb   :  { %v1919_v24 = vmul.f32 %v1917_v23, %v1913_v22 }
0x20cd   :  { %1921 = vrot.lane.b32.xlu0 %v1919_v24, %s2789_s18  ;;  %v2195_v24 = vld [vmem:[%s3455_s1 + $0x2e0] ss:$0 sm:$0xff] }
0x213f   :  { %v1922_v25 = vpop.permute.xlu0 %1921 }
0x2140   :  { %v1924_v26 = vadd.f32 %v1922_v25, %v1833_v16  ;;  %v2196_v25 = vld [vmem:[%s3455_s1 + $0x2f0] ss:$0 sm:$0xff] }
0x2142   :  { %2749 = vtanh.f32 %v1924_v26  ;;  %v2197_v26 = vsub.f32 %v2195_v24, %v2196_v25 }
0x2143   :  { %2751 = vtanh.f32 %v1138_v49 }
0x214c   :  { %v2750_v28 = vpop.eup %2749 }
0x214d   :  { %1928 = vrot.lane.b32.xlu1 %v2750_v28, %s2804_s22  ;;  %v2752_v36 = vpop.eup %2751  ;;  %v2201_v28 = vadd.f32 %v2196_v25, %v2195_v24 }
0x214e   :  { %v1140_v53 = vmul.f32 0.5, %v2752_v36 }
0x2150   :  { %v1141_v37 = vadd.f32 0.5, %v1140_v53 }
0x2152   :  { %v1150_v4 = vsub.f32 1.0, %v1141_v37 }
0x21bf   :  { %v1929_v31 = vpop.permute.xlu1 %1928 }
0x21c0   :  { %v1931_v33 = vmul.f32 %v1929_v31, %v1926_v29  ;;  %v2198_v29 = vmul.f32 0.5, %v2197_v26  ;;  %v2202_v31 = vmul.f32 0.5, %v2201_v28 }
0x21c2   :  { %v3382_v42 = vadd.f32 %v1932_v32, %v1931_v33 }
0x21c4   :  { %1936 = vrot.lane.b32.xlu0 %v3382_v42, %s2804_s22 }
0x2236   :  { %v1937_v35 = vpop.permute.xlu0 %1936 }
0x2237   :  { %2448 = vmatmul.mubr.msk.f32.vlgmr.msra.gmra.mrb[34].mxu0 %vm1327_vm11, %v1937_v35 }
0x2238   :  { %2469 = vmatprep.mubr.msk.f32.mxu0 %vm2803_vm9, %v2786_v7  ;;  %v1143_v7 = vmul.f32 %v1142_v39, %v1141_v37  ;;  %2666 = vmatpush3.bf16.msra.mxu0 %v2665_v52 }
0x2239   :  { %2667 = vmatprep.subr.bf16.mxu0 %v2802_v19 }
0x223c   :  { %2669 = vmatpush3.bf16.msra.mxu0 %v2668_v61 }
0x230a   :  { %v2006_v56 = vpop.f32.mrb[34].mxu0 }
0x230b   :  { %v2015_v57 = vadd.f32 %v2006_v56, %v3320_v34  ;;  %v2449_v60 = vpop.f32.mrb[35].mxu0  ;;  %v2010_v54 = vadd.f32 %v2006_v56, %v1934_v40 }
0x230d   :  { %2017 = vrot.lane.b32.xlu1 %v2015_v57, %s2789_s18  ;;  %v2011_v41 = vmul.f32 0.5, %v2010_v54 }
0x230f   :  { %2753 = vtanh.f32 %v2011_v41 }
0x2311   :  { %1145 = vrot.lane.b32.xlu1 %v1143_v7, %s2789_s18 }
0x2319   :  { %v2754_v44 = vpop.eup %2753 }
0x231a   :  { %v2013_v1 = vmul.f32 0.5, %v2754_v44 }
0x231c   :  { %v2014_v45 = vadd.f32 0.5, %v2013_v1 }
0x231e   :  { %v2027_v8 = vsub.f32 1.0, %v2014_v45  ;;  %v2033_v10 = vmul.f32 %v2014_v45, %v3382_v42 }
0x237f   :  { %v2018_v46 = vpop.permute.xlu1 %2017 }
0x2380   :  { %v2020_v34 = vmul.f32 %v2018_v46, %v2014_v45 }
0x2382   :  { %2022 = vrot.lane.b32.xlu0 %v2020_v34, %s2789_s18 }
0x2383   :  { %v1146_v47 = vpop.permute.xlu1 %1145 }
0x2384   :  { %v1148_v48 = vadd.f32 %v1146_v47, %v1135_v43 }
0x2386   :  { %2755 = vtanh.f32 %v1148_v48 }
0x2390   :  { %v2756_v55 = vpop.eup %2755 }
0x2391   :  { %1152 = vrot.lane.b32.xlu1 %v2756_v55, %s2804_s22 }
0x23f4   :  { %v2023_v0 = vpop.permute.xlu0 %2022 }
0x23f5   :  { %v2025_v11 = vadd.f32 %v2023_v0, %v1934_v40 }
0x23f7   :  { %2757 = vtanh.f32 %v2025_v11 }
0x2401   :  { %v2758_v3 = vpop.eup %2757 }
0x2402   :  { %2029 = vrot.lane.b32.xlu0 %v2758_v3, %s2804_s22 }
0x2403   :  { %v1153_v5 = vpop.permute.xlu1 %1152 }
0x2404   :  { %v1155_v6 = vmul.f32 %v1153_v5, %v1150_v4 }
0x2406   :  { %2119 = vrot.lane.b32.xlu1 %v1155_v6, %s2804_s22 }
0x2474   :  { %v2030_v9 = vpop.permute.xlu0 %2029 }
0x2475   :  { %v2032_v12 = vmul.f32 %v2030_v9, %v2027_v8 }
0x2477   :  { %v2034_v13 = vadd.f32 %v2033_v10, %v2032_v12 }
0x2478   :  { %v2120_v15 = vpop.permute.xlu1 %2119 }
0x2479   :  { %2470 = vmatmul.mubr.msk.f32.vlgmr.msra.gmra.mrb[36].mxu0 %vm1327_vm11, %v2120_v15  ;;  %2044 = vrot.lane.b32.xlu0 %v2034_v13, %s2804_s22  ;;  %s2761_s22 = scalar_lea.vmem %s2213_s21, 32 }
0x247a   :  { %p2762_p0 = scmp.ne.s32.totalorder %s2213_s21, %s2761_s22  ;;  %p2767_p2 = scmp.lt.s32.totalorder %s2761_s22, %s2761_s22 }
0x247c   :  { %p2768_p3 = por %p2767_p2, %p2766_p1 }
0x247e   :  { %p2769_p4 = pnand %p2768_p3, %p2762_p0 }
0x24eb   :  { %v2045_v19 = vpop.permute.xlu0 %2044 }
0x24ec   :  { %2459 = vmatmul.mubr.msk.f32.vlgmr.msra.gmra.mrb[18].mxu1 %vm1327_vm11, %v2045_v19 }
0x254c   :  { %v2189_v16 = vpop.f32.mrb[36].mxu0 }
0x254d   :  { %v2471_v17 = vpop.f32.mrb[37].mxu0 }
0x25bf   :  { %v2114_v14 = vpop.f32.mrb[18].mxu1 }
0x25c0   :  { %v2190_v30 = vadd.f32 %v2189_v16, %v2114_v14  ;;  %v2460_v22 = vpop.f32.mrb[19].mxu1 }
0x25c2   :  { %v2194_v23 = vadd.f32 %v2193_v18, %v2190_v30 }
0x25c4   :  { %2759 = vtanh.f32 %v2194_v23 }
0x25ce   :  { %v2760_v32 = vpop.eup %2759 }
0x25cf   :  { %v2200_v33 = vmul.f32 %v2760_v32, %v2198_v29 }
0x25d1   :  { %v2203_v42 = vadd.f32 %v2202_v31, %v2200_v33 }
0x25d3   :  { %2205 = vst.msk [vmem:[#allocation6] sm:$0x3] %vm2204_vm12, %v2203_v42 }
0x25d4   :  { %2772 = shalt.err (!%p2769_p4)
}
0x25d5   :  { %s2773_s24 = scalar_lea.hbm %s3456_s2, 32 }
0x25d6   :  { %p2774_p5 = scmp.ne.s32.totalorder %s3456_s2, %s2773_s24  ;;  %p2777_p6 = scmp.lt.u32.totalorder %s2773_s24, %s3456_s2 }
0x25d8   :  { %p2779_p7 = pnand %p2777_p6, %p2774_p5 }
0x25da   :  { %2782 = shalt.err (!%p2779_p7)
}
0x25db   :  { %2215 = dma.vmem_to_hbm [thread:$0]  %s2213_s21, 32, %s3456_s2, [#allocation7]  }
0x25dc   :  { %2783 = dma.done.wait [#allocation7], 32  }
0x25dd   :  { %2784 = vsyncadd [#allocation7], 4294967264 }
0x25de   :  { %2219 = vsyncpa [#allocation7], 1 }

</bundles_post_ra>
